<compile_context>
chip_gen: v6e
topology: v6e:2x2x1
jax: 0.10.0
libtpu: 0.0.40
codegen_flags: <defaults>
</compile_context>

<pallas_src>
import jax
import jax.numpy as jnp
from jax.experimental import pallas as pl
from jax.experimental.pallas import tpu as pltpu

FOCAL_ALPHA = 0.1
FOCAL_GAMMA = 0.2
GIOU_EPS = 1e-7          # torchvision generalized_box_iou_loss default eps


def _round_up(x, m):
    return ((x + m - 1) // m) * m


def _vmem_limit_bytes():
    # Generation-aware scoped-VMEM limit: half of physical, capped at 64 MiB.
    try:
        cap = int(getattr(pltpu.get_tpu_info(), "vmem_capacity_bytes", 0)) or (128 << 20)
    except Exception:
        cap = 128 << 20
    return int(min(cap // 2, 64 << 20))


# --------------------------------------------------------------------------- #
# Kernel 1: fused matching cost + per-target argmin over a query tile
# --------------------------------------------------------------------------- #
def _cost_match_kernel(logits_ref, bpred_ref, labels_ref, btgt_t_ref,
                       minv_ref, mini_ref):
    # logits_ref : (1, qblk, C)   class logits
    # bpred_ref  : (1, qblk, 4)   predicted boxes (xyxy)
    # labels_ref : (1, 1, TP)     int32 target class ids, padded with -1
    # btgt_t_ref : (1, 4, TP)     target boxes transposed (coords on sublanes), pad 0
    # minv_ref   : (1, 1, 8, TP)  per-tile min cost over queries (sublane-broadcast)
    # mini_ref   : (1, 1, 8, TP)  per-tile argmin query index (global), int32
    x = logits_ref[0].astype(jnp.float32)        # (qblk, C)
    pred = bpred_ref[0].astype(jnp.float32)      # (qblk, 4)
    labels = labels_ref[0]                       # (1, TP) int32
    tgt = btgt_t_ref[0].astype(jnp.float32)      # (4, TP)

    qblk, C = x.shape
    TP = labels.shape[-1]

    # one-hot gather matrix (padded columns -> all-zero)
    cls_iota = jax.lax.broadcasted_iota(jnp.int32, (C, TP), 0)
    onehot = (cls_iota == labels).astype(jnp.float32)                # (C, TP)

    def focal_delta(z):
        # focal class-cost delta = pos_cost - neg_cost (elementwise in the logit)
        #   -log(1-p) = softplus(z) = s_neg ; -log(p) = softplus(-z) = s_pos
        #   p^g = exp(-g*s_pos)     ; (1-p)^g = exp(-g*s_neg)
        e = jnp.exp(-jnp.abs(z))
        s_neg = jnp.maximum(z, 0.0) + jnp.log(1.0 + e)
        s_pos = s_neg - z
        pos_cost = FOCAL_ALPHA * jnp.exp(-FOCAL_GAMMA * s_neg) * s_pos
        neg_cost = (1.0 - FOCAL_ALPHA) * jnp.exp(-FOCAL_GAMMA * s_pos) * s_neg
        return pos_cost - neg_cost

    if C > TP:
        # gather logits first (MXU), run transcendentals on TP columns only
        xg = jnp.dot(x, onehot, preferred_element_type=jnp.float32)   # (qblk, TP)
        cost_class = focal_delta(xg)
    else:
        cost_class = jnp.dot(focal_delta(x), onehot,
                             preferred_element_type=jnp.float32)      # (qblk, TP)

    # pairwise L1 + negative GIoU on lane-dense (qblk, TP) tiles
    px1, py1, px2, py2 = pred[:, 0:1], pred[:, 1:2], pred[:, 2:3], pred[:, 3:4]
    tx1, ty1, tx2, ty2 = tgt[0:1, :], tgt[1:2, :], tgt[2:3, :], tgt[3:4, :]
    cost_bbox = (jnp.abs(px1 - tx1) + jnp.abs(py1 - ty1) +
                 jnp.abs(px2 - tx2) + jnp.abs(py2 - ty2))              # (qblk, TP)

    iw = jnp.maximum(jnp.minimum(px2, tx2) - jnp.maximum(px1, tx1), 0.0)
    ih = jnp.maximum(jnp.minimum(py2, ty2) - jnp.maximum(py1, ty1), 0.0)
    inter = iw * ih
    area_p = (px2 - px1) * (py2 - py1)
    area_t = (tx2 - tx1) * (ty2 - ty1)
    union = area_p + area_t - inter
    inv_union = pl.reciprocal(union + GIOU_EPS, approx=True)          # EUP slot
    iou = inter * inv_union
    cw = jnp.maximum(px2, tx2) - jnp.minimum(px1, tx1)
    ch = jnp.maximum(py2, ty2) - jnp.minimum(py1, ty1)
    area_c = cw * ch
    inv_ac = pl.reciprocal(area_c + GIOU_EPS, approx=True)             # EUP slot
    giou = iou - (area_c - union) * inv_ac

    cost = cost_class + cost_bbox - giou                               # (qblk, TP)

    # fused per-target argmin over this query tile (first occurrence, like jnp.argmin)
    q0 = pl.program_id(1) * qblk
    q_iota = jax.lax.broadcasted_iota(jnp.int32, (qblk, TP), 0) + q0
    min_val = jnp.min(cost, axis=0, keepdims=True)                     # (1, TP)
    big = jnp.int32(2147483647)
    min_idx = jnp.min(jnp.where(cost == min_val, q_iota, big),
                      axis=0, keepdims=True)                           # (1, TP)

    minv_ref[0, 0] = jnp.broadcast_to(min_val, (8, TP))
    mini_ref[0, 0] = jnp.broadcast_to(min_idx, (8, TP))


def compute_matching(class_logits, boxes_preds, class_labels, boxes_labels):
    """MinCost matching (focal class cost + pairwise L1 + (-GIoU), unit weights):
    per-target argmin over queries, fused into the cost kernel. Returns (B, T) int32."""
    B, Q, C = class_logits.shape
    T = class_labels.shape[1]
    TP = _round_up(max(T, 1), 128)               # lane-dense target dim

    vmem_limit = _vmem_limit_bytes()
    # byte-budget-derived q tile (double-buffered logits + cost/delta intermediates)
    per_q_bytes = 4 * (3 * C + 3 * TP + 32)
    q_cap = max(8, int(vmem_limit * 0.6) // per_q_bytes)
    if Q <= q_cap:
        qblk = Q
    else:
        qblk = Q
        for cand in (8192, 4096, 2048, 1024, 512, 256, 128, 64, 32, 16, 8):
            if cand <= q_cap and Q % cand == 0:
                qblk = cand
                break
    nq = Q // qblk

    labels_p = jnp.pad(class_labels.astype(jnp.int32), ((0, 0), (0, TP - T)),
                       constant_values=-1).reshape(B, 1, TP)            # (B, 1, TP)
    btgt_t = jnp.pad(jnp.transpose(boxes_labels, (0, 2, 1)).astype(jnp.float32),
                     ((0, 0), (0, 0), (0, TP - T)))                     # (B, 4, TP)

    minv, mini = pl.pallas_call(
        _cost_match_kernel,
        out_shape=(jax.ShapeDtypeStruct((B, nq, 8, TP), jnp.float32),
                   jax.ShapeDtypeStruct((B, nq, 8, TP), jnp.int32)),
        grid=(B, nq),
        in_specs=[
            pl.BlockSpec((1, qblk, C), lambda b, q: (b, q, 0)),
            pl.BlockSpec((1, qblk, 4), lambda b, q: (b, q, 0)),
            pl.BlockSpec((1, 1, TP), lambda b, q: (b, 0, 0)),
            pl.BlockSpec((1, 4, TP), lambda b, q: (b, 0, 0)),
        ],
        out_specs=(pl.BlockSpec((1, 1, 8, TP), lambda b, q: (b, q, 0, 0)),
                   pl.BlockSpec((1, 1, 8, TP), lambda b, q: (b, q, 0, 0))),
        compiler_params=pltpu.CompilerParams(
            dimension_semantics=("parallel", "parallel"),
            vmem_limit_bytes=vmem_limit),
    )(class_logits, boxes_preds, labels_p, btgt_t)

    # drop padded target columns, combine across q tiles (tiny: B * nq * T)
    minv = minv[:, :, 0, :T]                      # (B, nq, T)
    mini = mini[:, :, 0, :T]                      # (B, nq, T)
    if nq == 1:
        return mini[:, 0, :]
    best_tile = jnp.argmin(minv, axis=1)          # (B, T)
    return jnp.take_along_axis(mini, best_tile[:, None, :], axis=1)[:, 0, :]


# --------------------------------------------------------------------------- #
# Kernel 2: sigmoid focal loss, reduction='sum' (torchvision semantics),
#           lane-packed (k rows per vreg row), large row blocks, partial sums.
# --------------------------------------------------------------------------- #
def _focal_loss_kernel(pos_ref, logits_ref, out_ref):
    # pos_ref    : (blk, k)     int32 positive lane id per packed slot (-1 = none)
    # logits_ref : (blk, k*C)   lane-packed logits (pad rows hold -100 -> loss ~ 0)
    # out_ref    : (1, 8, 128)  lane-dense partial-sum tile
    x = logits_ref[...].astype(jnp.float32)
    blk, width = x.shape
    k = pos_ref.shape[-1]

    lane = jax.lax.broadcasted_iota(jnp.int32, (blk, width), 1)
    is_pos = lane == pos_ref[:, 0:1]
    for j in range(1, k):                         # k small (<= 128//C), static loop
        is_pos = jnp.logical_or(is_pos, lane == pos_ref[:, j:j + 1])

    # t in {0,1} closed form: ce = softplus(-/+x), (1-p_t)^g = exp(-g*softplus(+/-x))
    e = jnp.exp(-jnp.abs(x))
    s_neg = jnp.maximum(x, 0.0) + jnp.log(1.0 + e)   # softplus(x)  = BCE when t = 0
    s_pos = s_neg - x                                # softplus(-x) = BCE when t = 1
    ce = jnp.where(is_pos, s_pos, s_neg)
    mod = jnp.exp(-FOCAL_GAMMA * jnp.where(is_pos, s_neg, s_pos))
    alpha_t = jnp.where(is_pos, FOCAL_ALPHA, 1.0 - FOCAL_ALPHA)
    loss = alpha_t * ce * mod

    # lane-dense partial-sum tile (keeps the row-grid axis 'parallel')
    out_ref[...] = jnp.full(out_ref.shape, 1.0, dtype=jnp.float32) * jnp.sum(loss)


def sigmoid_focal_loss_sum(logits2d, target_classes, num_classes):
    rows, C = logits2d.shape
    k = max(1, 128 // C) if C < 128 else 1        # lane-packing factor
    width = k * C

    vmem_limit = _vmem_limit_bytes()
    per_row_bytes = 4 * (6 * width + 2 * k)       # dbl-buffered logits + temporaries
    row_cap = max(8, min(8192, int(vmem_limit * 0.6) // per_row_bytes))
    row_cap = (row_cap // 8) * 8

    packed_rows = -(-rows // k)                   # ceil
    row_blk = min(row_cap, _round_up(packed_rows, 8))
    packed_rows_pad = _round_up(packed_rows, row_blk)
    rows_pad = packed_rows_pad * k

    tgt = target_classes.astype(jnp.int32)
    if rows_pad != rows:
        # pad logits with -100 and targets with background: focal contribution ~ 0,
        # so no per-lane validity mask is needed in the kernel.
        logits2d = jnp.pad(logits2d, ((0, rows_pad - rows), (0, 0)),
                           constant_values=-100.0)
        tgt = jnp.pad(tgt, ((0, rows_pad - rows),), constant_values=num_classes)

    slot = (jnp.arange(rows_pad, dtype=jnp.int32) % k) * C
    pos_lane = jnp.where(tgt < num_classes, slot + tgt, -1)   # -1: no positive lane

    logits_packed = logits2d.reshape(packed_rows_pad, width)
    pos_packed = pos_lane.reshape(packed_rows_pad, k)
    G = packed_rows_pad // row_blk

    partials = pl.pallas_call(
        _focal_loss_kernel,
        out_shape=jax.ShapeDtypeStruct((G, 8, 128), jnp.float32),
        grid=(G,),
        in_specs=[pl.BlockSpec((row_blk, k), lambda g: (g, 0)),
                  pl.BlockSpec((row_blk, width), lambda g: (g, 0))],
        out_specs=pl.BlockSpec((1, 8, 128), lambda g: (g, 0, 0)),
        compiler_params=pltpu.CompilerParams(
            dimension_semantics=("parallel",),
            vmem_limit_bytes=vmem_limit),
    )(pos_packed, logits_packed)
    return jnp.sum(partials[:, 0, 0])


# --------------------------------------------------------------------------- #
# Matched-pair box losses (tiny: B*T rows x 4 cols) — plain JAX per perf review
# --------------------------------------------------------------------------- #
def _giou_loss_sum(pred, tgt):
    px1, py1, px2, py2 = pred[:, 0], pred[:, 1], pred[:, 2], pred[:, 3]
    tx1, ty1, tx2, ty2 = tgt[:, 0], tgt[:, 1], tgt[:, 2], tgt[:, 3]
    iw = jnp.maximum(jnp.minimum(px2, tx2) - jnp.maximum(px1, tx1), 0.0)
    ih = jnp.maximum(jnp.minimum(py2, ty2) - jnp.maximum(py1, ty1), 0.0)
    inter = iw * ih
    union = (px2 - px1) * (py2 - py1) + (tx2 - tx1) * (ty2 - ty1) - inter
    iou = inter / (union + GIOU_EPS)
    area_c = (jnp.maximum(px2, tx2) - jnp.minimum(px1, tx1)) * \
             (jnp.maximum(py2, ty2) - jnp.minimum(py1, ty1))
    giou = iou - (area_c - union) / (area_c + GIOU_EPS)
    return jnp.sum(1.0 - giou)


# --------------------------------------------------------------------------- #
# OneNetLoss forward (glue + kernels)
# --------------------------------------------------------------------------- #
def onenet_loss(class_logits, boxes_preds, class_labels, boxes_labels, image_size):
    """
    class_logits : (B, Q, C) float32
    boxes_preds  : (B, Q, 4) float32, xyxy in [0, 1]
    class_labels : (B, T)    int32 class ids (< C)
    boxes_labels : (B, T, 4) float32, xyxy in [0, 1]
    image_size   : (2,)      float32
    """
    B, Q, C = class_logits.shape
    T = class_labels.shape[1]

    # TODO(synk): the reference `Matcher` class is not provided; we implement an
    # OneNet-style MinCost matcher (focal class cost + L1 + GIoU, unit weights,
    # per-target argmin over queries), fused cost + argmin in a Pallas kernel.
    src_idx = compute_matching(class_logits, boxes_preds, class_labels, boxes_labels)  # (B, T)
    batch_idx = jnp.broadcast_to(jnp.arange(B, dtype=jnp.int32)[:, None], (B, T))

    # ---- classification targets: matched query -> class id, else background (= C) ----
    target_classes = jnp.full((B, Q), C, dtype=jnp.int32)
    target_classes = target_classes.at[batch_idx.reshape(-1), src_idx.reshape(-1)].set(
        class_labels.reshape(-1).astype(jnp.int32))
    class_loss = sigmoid_focal_loss_sum(class_logits.reshape(B * Q, C),
                                        target_classes.reshape(B * Q), C)

    # ---- box losses on matched pairs ----
    matched_preds = boxes_preds[batch_idx.reshape(-1), src_idx.reshape(-1)]           # (B*T, 4)
    matched_tgts = boxes_labels.reshape(B * T, 4)                                     # tgt = arange(T)
    giou_sum = _giou_loss_sum(matched_preds, matched_tgts)
    l1_sum = jnp.sum(jnp.abs(matched_preds - matched_tgts))

    return {
        "class_loss": class_loss,
        "bbox_location": giou_sum,
        "bbox_regression_loss": l1_sum / image_size[0],
    }


if __name__ == "__main__":
    B, Q, C, T = 2, 64, 32, 4   # batch, queries, num_classes, num_targets

    key = jax.random.PRNGKey(0)
    k1, k2, k3, k4, k5, k6 = jax.random.split(key, 6)

    class_logits = jax.random.normal(k1, (B, Q, C), dtype=jnp.float32)

    xy_p = jax.random.uniform(k2, (B, Q, 2), minval=0.0, maxval=0.5, dtype=jnp.float32)
    wh_p = jax.random.uniform(k3, (B, Q, 2), minval=0.1, maxval=0.45, dtype=jnp.float32)
    boxes_preds = jnp.concatenate([xy_p, xy_p + wh_p], axis=-1)

    class_labels = jax.random.randint(k4, (B, T), 0, C, dtype=jnp.int32)
    xy_t = jax.random.uniform(k5, (B, T, 2), minval=0.0, maxval=0.5, dtype=jnp.float32)
    wh_t = jax.random.uniform(k6, (B, T, 2), minval=0.1, maxval=0.45, dtype=jnp.float32)
    boxes_labels = jnp.concatenate([xy_t, xy_t + wh_t], axis=-1)

    image_size = jnp.array([256.0, 256.0], dtype=jnp.float32)

    losses = jax.jit(onenet_loss)(class_logits, boxes_preds, class_labels,
                                  boxes_labels, image_size)
    jax.block_until_ready(losses)
    print("KERNEL_OK")
</pallas_src>

<mosaic_0001>
module attributes {stable_mosaic.version = 11 : i64} {
  func.func @_cost_match_kernel(%arg0: i32, %arg1: i32, %arg2: memref<1x64x32xf32, #tpu.memory_space<vmem>>, %arg3: memref<1x64x4xf32, #tpu.memory_space<vmem>>, %arg4: memref<1x1x128xi32, #tpu.memory_space<vmem>>, %arg5: memref<1x4x128xf32, #tpu.memory_space<vmem>>, %arg6: memref<1x1x8x128xf32, #tpu.memory_space<vmem>>, %arg7: memref<1x1x8x128xi32, #tpu.memory_space<vmem>>) attributes {dimension_semantics = [#tpu.dimension_semantics<parallel>, #tpu.dimension_semantics<parallel>], iteration_bounds = array<i64: 2, 1>, scalar_prefetch = 0 : i64, scratch_operands = 0 : i64, tpu.core_type = #tpu.core_type<tc>, window_params = [{transform_indices = @transform_0, window_bounds = array<i64: 1, 64, 32>}, {transform_indices = @transform_1, window_bounds = array<i64: 1, 64, 4>}, {transform_indices = @transform_2, window_bounds = array<i64: 1, 1, 128>}, {transform_indices = @transform_3, window_bounds = array<i64: 1, 4, 128>}, {transform_indices = @transform_4, window_bounds = array<i64: 1, 1, 8, 128>}, {transform_indices = @transform_5, window_bounds = array<i64: 1, 1, 8, 128>}]} {
    %c0 = arith.constant 0 : index
    %c0_0 = arith.constant 0 : index
    %c0_1 = arith.constant 0 : index
    %0 = vector.load %arg2[%c0, %c0_0, %c0_1] : memref<1x64x32xf32, #tpu.memory_space<vmem>>, vector<1x64x32xf32>
    %1 = vector.shape_cast %0 : vector<1x64x32xf32> to vector<64x32xf32>
    %c0_2 = arith.constant 0 : index
    %c0_3 = arith.constant 0 : index
    %c0_4 = arith.constant 0 : index
    %2 = vector.load %arg3[%c0_2, %c0_3, %c0_4] : memref<1x64x4xf32, #tpu.memory_space<vmem>>, vector<1x64x4xf32>
    %3 = vector.shape_cast %2 : vector<1x64x4xf32> to vector<64x4xf32>
    %c0_5 = arith.constant 0 : index
    %c0_6 = arith.constant 0 : index
    %c0_7 = arith.constant 0 : index
    %4 = vector.load %arg4[%c0_5, %c0_6, %c0_7] : memref<1x1x128xi32, #tpu.memory_space<vmem>>, vector<1x1x128xi32>
    %5 = vector.shape_cast %4 : vector<1x1x128xi32> to vector<1x128xi32>
    %c0_8 = arith.constant 0 : index
    %c0_9 = arith.constant 0 : index
    %c0_10 = arith.constant 0 : index
    %6 = vector.load %arg5[%c0_8, %c0_9, %c0_10] : memref<1x4x128xf32, #tpu.memory_space<vmem>>, vector<1x4x128xf32>
    %7 = vector.shape_cast %6 : vector<1x4x128xf32> to vector<4x128xf32>
    %8 = tpu.iota {dimensions = array<i32: 0>} : vector<32x128xi32>
    %9 = vector.broadcast %5 : vector<1x128xi32> to vector<32x128xi32>
    %10 = arith.cmpi eq, %8, %9 : vector<32x128xi32>
    %11 = arith.extui %10 : vector<32x128xi1> to vector<32x128xi32>
    %12 = arith.sitofp %11 : vector<32x128xi32> to vector<32x128xf32>
    %13 = math.absf %1 : vector<64x32xf32>
    %cst = arith.constant 0.000000e+00 : f32
    %14 = vector.broadcast %cst : f32 to vector<64x32xf32>
    %15 = arith.subf %14, %13 : vector<64x32xf32>
    %16 = math.exp %15 : vector<64x32xf32>
    %cst_11 = arith.constant 0.000000e+00 : f32
    %17 = vector.broadcast %cst_11 : f32 to vector<64x32xf32>
    %18 = arith.maximumf %1, %17 : vector<64x32xf32>
    %cst_12 = arith.constant 1.000000e+00 : f32
    %19 = vector.broadcast %cst_12 : f32 to vector<64x32xf32>
    %20 = arith.addf %19, %16 : vector<64x32xf32>
    %21 = math.log %20 : vector<64x32xf32>
    %22 = arith.addf %18, %21 : vector<64x32xf32>
    %23 = arith.subf %22, %1 : vector<64x32xf32>
    %cst_13 = arith.constant -2.000000e-01 : f32
    %24 = vector.broadcast %cst_13 : f32 to vector<64x32xf32>
    %25 = arith.mulf %24, %22 : vector<64x32xf32>
    %26 = math.exp %25 : vector<64x32xf32>
    %cst_14 = arith.constant 1.000000e-01 : f32
    %27 = vector.broadcast %cst_14 : f32 to vector<64x32xf32>
    %28 = arith.mulf %27, %26 : vector<64x32xf32>
    %29 = arith.mulf %28, %23 : vector<64x32xf32>
    %cst_15 = arith.constant -2.000000e-01 : f32
    %30 = vector.broadcast %cst_15 : f32 to vector<64x32xf32>
    %31 = arith.mulf %30, %23 : vector<64x32xf32>
    %32 = math.exp %31 : vector<64x32xf32>
    %cst_16 = arith.constant 0.899999976 : f32
    %33 = vector.broadcast %cst_16 : f32 to vector<64x32xf32>
    %34 = arith.mulf %33, %32 : vector<64x32xf32>
    %35 = arith.mulf %34, %22 : vector<64x32xf32>
    %36 = arith.subf %29, %35 : vector<64x32xf32>
    %cst_17 = arith.constant dense<0.000000e+00> : vector<64x128xf32>
    %37 = tpu.matmul %36, %12, %cst_17 {dimension_numbers = #tpu.dot_dimension_numbers<[1], [0], [0], [1], [0, 0, 1, 1], [], []>} : vector<64x32xf32>, vector<32x128xf32>, vector<64x128xf32> -> vector<64x128xf32>
    %38 = vector.extract_strided_slice %3 {offsets = [0, 0], sizes = [64, 1], strides = [1, 1]} : vector<64x4xf32> to vector<64x1xf32>
    %39 = vector.extract_strided_slice %3 {offsets = [0, 1], sizes = [64, 1], strides = [1, 1]} : vector<64x4xf32> to vector<64x1xf32>
    %40 = vector.extract_strided_slice %3 {offsets = [0, 2], sizes = [64, 1], strides = [1, 1]} : vector<64x4xf32> to vector<64x1xf32>
    %41 = vector.extract_strided_slice %3 {offsets = [0, 3], sizes = [64, 1], strides = [1, 1]} : vector<64x4xf32> to vector<64x1xf32>
    %42 = vector.extract_strided_slice %7 {offsets = [0, 0], sizes = [1, 128], strides = [1, 1]} : vector<4x128xf32> to vector<1x128xf32>
    %43 = vector.extract_strided_slice %7 {offsets = [1, 0], sizes = [1, 128], strides = [1, 1]} : vector<4x128xf32> to vector<1x128xf32>
    %44 = vector.extract_strided_slice %7 {offsets = [2, 0], sizes = [1, 128], strides = [1, 1]} : vector<4x128xf32> to vector<1x128xf32>
    %45 = vector.extract_strided_slice %7 {offsets = [3, 0], sizes = [1, 128], strides = [1, 1]} : vector<4x128xf32> to vector<1x128xf32>
    %46 = vector.broadcast %38 : vector<64x1xf32> to vector<64x128xf32>
    %47 = vector.broadcast %42 : vector<1x128xf32> to vector<64x128xf32>
    %48 = arith.subf %46, %47 : vector<64x128xf32>
    %49 = math.absf %48 : vector<64x128xf32>
    %50 = vector.broadcast %39 : vector<64x1xf32> to vector<64x128xf32>
    %51 = vector.broadcast %43 : vector<1x128xf32> to vector<64x128xf32>
    %52 = arith.subf %50, %51 : vector<64x128xf32>
    %53 = math.absf %52 : vector<64x128xf32>
    %54 = arith.addf %49, %53 : vector<64x128xf32>
    %55 = vector.broadcast %40 : vector<64x1xf32> to vector<64x128xf32>
    %56 = vector.broadcast %44 : vector<1x128xf32> to vector<64x128xf32>
    %57 = arith.subf %55, %56 : vector<64x128xf32>
    %58 = math.absf %57 : vector<64x128xf32>
    %59 = arith.addf %54, %58 : vector<64x128xf32>
    %60 = vector.broadcast %41 : vector<64x1xf32> to vector<64x128xf32>
    %61 = vector.broadcast %45 : vector<1x128xf32> to vector<64x128xf32>
    %62 = arith.subf %60, %61 : vector<64x128xf32>
    %63 = math.absf %62 : vector<64x128xf32>
    %64 = arith.addf %59, %63 : vector<64x128xf32>
    %65 = vector.broadcast %40 : vector<64x1xf32> to vector<64x128xf32>
    %66 = vector.broadcast %44 : vector<1x128xf32> to vector<64x128xf32>
    %67 = arith.minimumf %65, %66 : vector<64x128xf32>
    %68 = vector.broadcast %38 : vector<64x1xf32> to vector<64x128xf32>
    %69 = vector.broadcast %42 : vector<1x128xf32> to vector<64x128xf32>
    %70 = arith.maximumf %68, %69 : vector<64x128xf32>
    %71 = arith.subf %67, %70 : vector<64x128xf32>
    %cst_18 = arith.constant 0.000000e+00 : f32
    %72 = vector.broadcast %cst_18 : f32 to vector<64x128xf32>
    %73 = arith.maximumf %71, %72 : vector<64x128xf32>
    %74 = vector.broadcast %41 : vector<64x1xf32> to vector<64x128xf32>
    %75 = vector.broadcast %45 : vector<1x128xf32> to vector<64x128xf32>
    %76 = arith.minimumf %74, %75 : vector<64x128xf32>
    %77 = vector.broadcast %39 : vector<64x1xf32> to vector<64x128xf32>
    %78 = vector.broadcast %43 : vector<1x128xf32> to vector<64x128xf32>
    %79 = arith.maximumf %77, %78 : vector<64x128xf32>
    %80 = arith.subf %76, %79 : vector<64x128xf32>
    %cst_19 = arith.constant 0.000000e+00 : f32
    %81 = vector.broadcast %cst_19 : f32 to vector<64x128xf32>
    %82 = arith.maximumf %80, %81 : vector<64x128xf32>
    %83 = arith.mulf %73, %82 : vector<64x128xf32>
    %84 = arith.subf %40, %38 : vector<64x1xf32>
    %85 = arith.subf %41, %39 : vector<64x1xf32>
    %86 = arith.mulf %84, %85 : vector<64x1xf32>
    %87 = arith.subf %44, %42 : vector<1x128xf32>
    %88 = arith.subf %45, %43 : vector<1x128xf32>
    %89 = arith.mulf %87, %88 : vector<1x128xf32>
    %90 = vector.broadcast %86 : vector<64x1xf32> to vector<64x128xf32>
    %91 = vector.broadcast %89 : vector<1x128xf32> to vector<64x128xf32>
    %92 = arith.addf %90, %91 : vector<64x128xf32>
    %93 = arith.subf %92, %83 : vector<64x128xf32>
    %cst_20 = arith.constant 1.000000e-07 : f32
    %94 = vector.broadcast %cst_20 : f32 to vector<64x128xf32>
    %95 = arith.addf %93, %94 : vector<64x128xf32>
    %96 = tpu.reciprocal %95 {approx = true} : vector<64x128xf32> -> vector<64x128xf32>
    %97 = arith.mulf %83, %96 : vector<64x128xf32>
    %98 = vector.broadcast %40 : vector<64x1xf32> to vector<64x128xf32>
    %99 = vector.broadcast %44 : vector<1x128xf32> to vector<64x128xf32>
    %100 = arith.maximumf %98, %99 : vector<64x128xf32>
    %101 = vector.broadcast %38 : vector<64x1xf32> to vector<64x128xf32>
    %102 = vector.broadcast %42 : vector<1x128xf32> to vector<64x128xf32>
    %103 = arith.minimumf %101, %102 : vector<64x128xf32>
    %104 = arith.subf %100, %103 : vector<64x128xf32>
    %105 = vector.broadcast %41 : vector<64x1xf32> to vector<64x128xf32>
    %106 = vector.broadcast %45 : vector<1x128xf32> to vector<64x128xf32>
    %107 = arith.maximumf %105, %106 : vector<64x128xf32>
    %108 = vector.broadcast %39 : vector<64x1xf32> to vector<64x128xf32>
    %109 = vector.broadcast %43 : vector<1x128xf32> to vector<64x128xf32>
    %110 = arith.minimumf %108, %109 : vector<64x128xf32>
    %111 = arith.subf %107, %110 : vector<64x128xf32>
    %112 = arith.mulf %104, %111 : vector<64x128xf32>
    %cst_21 = arith.constant 1.000000e-07 : f32
    %113 = vector.broadcast %cst_21 : f32 to vector<64x128xf32>
    %114 = arith.addf %112, %113 : vector<64x128xf32>
    %115 = tpu.reciprocal %114 {approx = true} : vector<64x128xf32> -> vector<64x128xf32>
    %116 = arith.subf %112, %93 : vector<64x128xf32>
    %117 = arith.mulf %116, %115 : vector<64x128xf32>
    %118 = arith.subf %97, %117 : vector<64x128xf32>
    %119 = arith.addf %37, %64 : vector<64x128xf32>
    %120 = arith.subf %119, %118 : vector<64x128xf32>
    %c64_i32 = arith.constant 64 : i32
    %121 = arith.muli %arg1, %c64_i32 : i32
    %122 = tpu.iota {dimensions = array<i32: 0>} : vector<64x128xi32>
    %123 = vector.broadcast %121 : i32 to vector<64x128xi32>
    %124 = arith.addi %122, %123 : vector<64x128xi32>
    %cst_22 = arith.constant dense<0x7F800000> : vector<128xf32>
    %125 = vector.multi_reduction <minimumf>, %120, %cst_22 [0] : vector<64x128xf32> to vector<128xf32>
    %126 = vector.shape_cast %125 : vector<128xf32> to vector<1x128xf32>
    %127 = vector.broadcast %126 : vector<1x128xf32> to vector<64x128xf32>
    %128 = arith.cmpf oeq, %120, %127 : vector<64x128xf32>
    %c2147483647_i32 = arith.constant 2147483647 : i32
    %129 = vector.broadcast %c2147483647_i32 : i32 to vector<64x128xi32>
    %130 = arith.select %128, %124, %129 : vector<64x128xi1>, vector<64x128xi32>
    %cst_23 = arith.constant dense<2147483647> : vector<128xi32>
    %131 = vector.multi_reduction <minsi>, %130, %cst_23 [0] : vector<64x128xi32> to vector<128xi32>
    %132 = vector.shape_cast %131 : vector<128xi32> to vector<1x128xi32>
    %133 = vector.shape_cast %126 : vector<1x128xf32> to vector<1x128xf32>
    %134 = vector.broadcast %133 : vector<1x128xf32> to vector<8x128xf32>
    %c0_24 = arith.constant 0 : index
    %c0_25 = arith.constant 0 : index
    %c0_26 = arith.constant 0 : index
    %c0_27 = arith.constant 0 : index
    %135 = vector.load %arg6[%c0_24, %c0_25, %c0_26, %c0_27] : memref<1x1x8x128xf32, #tpu.memory_space<vmem>>, vector<1x1x8x128xf32>
    %136 = vector.shape_cast %135 : vector<1x1x8x128xf32> to vector<8x128xf32>
    %137 = vector.shape_cast %134 : vector<8x128xf32> to vector<1x1x8x128xf32>
    tpu.vector_store %arg6[%c0_24, %c0_25, %c0_26, %c0_27], %137 {strides = array<i32>} : memref<1x1x8x128xf32, #tpu.memory_space<vmem>>, vector<1x1x8x128xf32>,
    %138 = vector.shape_cast %132 : vector<1x128xi32> to vector<1x128xi32>
    %139 = vector.broadcast %138 : vector<1x128xi32> to vector<8x128xi32>
    %c0_28 = arith.constant 0 : index
    %c0_29 = arith.constant 0 : index
    %c0_30 = arith.constant 0 : index
    %c0_31 = arith.constant 0 : index
    %140 = vector.load %arg7[%c0_28, %c0_29, %c0_30, %c0_31] : memref<1x1x8x128xi32, #tpu.memory_space<vmem>>, vector<1x1x8x128xi32>
    %141 = vector.shape_cast %140 : vector<1x1x8x128xi32> to vector<8x128xi32>
    %142 = vector.shape_cast %139 : vector<8x128xi32> to vector<1x1x8x128xi32>
    tpu.vector_store %arg7[%c0_28, %c0_29, %c0_30, %c0_31], %142 {strides = array<i32>} : memref<1x1x8x128xi32, #tpu.memory_space<vmem>>, vector<1x1x8x128xi32>,
    return
  }
  func.func @transform_0(%arg0: i32, %arg1: i32) -> (i32, i32, i32) {
    %c0_i32 = arith.constant 0 : i32
    %c0_i32_0 = arith.constant 0 : i32
    return %arg0, %arg1, %c0_i32 : i32, i32, i32
  }
  func.func @transform_1(%arg0: i32, %arg1: i32) -> (i32, i32, i32) {
    %c0_i32 = arith.constant 0 : i32
    %c0_i32_0 = arith.constant 0 : i32
    return %arg0, %arg1, %c0_i32 : i32, i32, i32
  }
  func.func @transform_2(%arg0: i32, %arg1: i32) -> (i32, i32, i32) {
    %c0_i32 = arith.constant 0 : i32
    %c0_i32_0 = arith.constant 0 : i32
    %c0_i32_1 = arith.constant 0 : i32
    return %arg0, %c0_i32, %c0_i32_0 : i32, i32, i32
  }
  func.func @transform_3(%arg0: i32, %arg1: i32) -> (i32, i32, i32) {
    %c0_i32 = arith.constant 0 : i32
    %c0_i32_0 = arith.constant 0 : i32
    %c0_i32_1 = arith.constant 0 : i32
    return %arg0, %c0_i32, %c0_i32_0 : i32, i32, i32
  }
  func.func @transform_4(%arg0: i32, %arg1: i32) -> (i32, i32, i32, i32) {
    %c0_i32 = arith.constant 0 : i32
    %c0_i32_0 = arith.constant 0 : i32
    %c0_i32_1 = arith.constant 0 : i32
    return %arg0, %arg1, %c0_i32, %c0_i32_0 : i32, i32, i32, i32
  }
  func.func @transform_5(%arg0: i32, %arg1: i32) -> (i32, i32, i32, i32) {
    %c0_i32 = arith.constant 0 : i32
    %c0_i32_0 = arith.constant 0 : i32
    %c0_i32_1 = arith.constant 0 : i32
    return %arg0, %arg1, %c0_i32, %c0_i32_0 : i32, i32, i32, i32
  }
}

module attributes {stable_mosaic.version = 11 : i64} {
  func.func @_focal_loss_kernel(%arg0: i32, %arg1: memref<32x4xi32, #tpu.memory_space<vmem>>, %arg2: memref<32x128xf32, #tpu.memory_space<vmem>>, %arg3: memref<1x8x128xf32, #tpu.memory_space<vmem>>) attributes {dimension_semantics = [#tpu.dimension_semantics<parallel>], iteration_bounds = array<i64: 1>, scalar_prefetch = 0 : i64, scratch_operands = 0 : i64, tpu.core_type = #tpu.core_type<tc>, window_params = [{transform_indices = @transform_0, window_bounds = array<i64: 32, 4>}, {transform_indices = @transform_1, window_bounds = array<i64: 32, 128>}, {transform_indices = @transform_2, window_bounds = array<i64: 1, 8, 128>}]} {
    %c0 = arith.constant 0 : index
    %c0_0 = arith.constant 0 : index
    %0 = vector.load %arg2[%c0, %c0_0] : memref<32x128xf32, #tpu.memory_space<vmem>>, vector<32x128xf32>
    %1 = tpu.iota {dimensions = array<i32: 1>} : vector<32x128xi32>
    %c0_1 = arith.constant 0 : index
    %c0_2 = arith.constant 0 : index
    %2 = vector.load %arg1[%c0_1, %c0_2] : memref<32x4xi32, #tpu.memory_space<vmem>>, vector<32x1xi32>
    %3 = vector.broadcast %2 : vector<32x1xi32> to vector<32x128xi32>
    %4 = arith.cmpi eq, %1, %3 : vector<32x128xi32>
    %c0_3 = arith.constant 0 : index
    %c1 = arith.constant 1 : index
    %5 = vector.load %arg1[%c0_3, %c1] : memref<32x4xi32, #tpu.memory_space<vmem>>, vector<32x1xi32>
    %6 = vector.broadcast %5 : vector<32x1xi32> to vector<32x128xi32>
    %7 = arith.cmpi eq, %1, %6 : vector<32x128xi32>
    %8 = arith.ori %4, %7 : vector<32x128xi1>
    %c0_4 = arith.constant 0 : index
    %c2 = arith.constant 2 : index
    %9 = vector.load %arg1[%c0_4, %c2] : memref<32x4xi32, #tpu.memory_space<vmem>>, vector<32x1xi32>
    %10 = vector.broadcast %9 : vector<32x1xi32> to vector<32x128xi32>
    %11 = arith.cmpi eq, %1, %10 : vector<32x128xi32>
    %12 = arith.ori %8, %11 : vector<32x128xi1>
    %c0_5 = arith.constant 0 : index
    %c3 = arith.constant 3 : index
    %13 = vector.load %arg1[%c0_5, %c3] : memref<32x4xi32, #tpu.memory_space<vmem>>, vector<32x1xi32>
    %14 = vector.broadcast %13 : vector<32x1xi32> to vector<32x128xi32>
    %15 = arith.cmpi eq, %1, %14 : vector<32x128xi32>
    %16 = arith.ori %12, %15 : vector<32x128xi1>
    %17 = math.absf %0 : vector<32x128xf32>
    %cst = arith.constant 0.000000e+00 : f32
    %18 = vector.broadcast %cst : f32 to vector<32x128xf32>
    %19 = arith.subf %18, %17 : vector<32x128xf32>
    %20 = math.exp %19 : vector<32x128xf32>
    %cst_6 = arith.constant 0.000000e+00 : f32
    %21 = vector.broadcast %cst_6 : f32 to vector<32x128xf32>
    %22 = arith.maximumf %0, %21 : vector<32x128xf32>
    %cst_7 = arith.constant 1.000000e+00 : f32
    %23 = vector.broadcast %cst_7 : f32 to vector<32x128xf32>
    %24 = arith.addf %23, %20 : vector<32x128xf32>
    %25 = math.log %24 : vector<32x128xf32>
    %26 = arith.addf %22, %25 : vector<32x128xf32>
    %27 = arith.subf %26, %0 : vector<32x128xf32>
    %28 = arith.select %16, %27, %26 : vector<32x128xi1>, vector<32x128xf32>
    %29 = arith.select %16, %26, %27 : vector<32x128xi1>, vector<32x128xf32>
    %cst_8 = arith.constant -2.000000e-01 : f32
    %30 = vector.broadcast %cst_8 : f32 to vector<32x128xf32>
    %31 = arith.mulf %30, %29 : vector<32x128xf32>
    %32 = math.exp %31 : vector<32x128xf32>
    %cst_9 = arith.constant 1.000000e-01 : f32
    %cst_10 = arith.constant 0.899999976 : f32
    %33 = vector.broadcast %cst_9 : f32 to vector<32x128xf32>
    %34 = vector.broadcast %cst_10 : f32 to vector<32x128xf32>
    %35 = arith.select %16, %33, %34 : vector<32x128xi1>, vector<32x128xf32>
    %36 = arith.mulf %35, %28 : vector<32x128xf32>
    %37 = arith.mulf %36, %32 : vector<32x128xf32>
    %cst_11 = arith.constant 1.000000e+00 : f32
    %38 = vector.broadcast %cst_11 : f32 to vector<1x8x128xf32>
    %39 = vector.shape_cast %37 : vector<32x128xf32> to vector<1x32x128xf32>
    %cst_12 = arith.constant dense<0.000000e+00> : vector<1xf32>
    %40 = vector.multi_reduction <add>, %39, %cst_12 [1, 2] : vector<1x32x128xf32> to vector<1xf32>
    %41 = vector.shape_cast %40 : vector<1xf32> to vector<1x1x1xf32>
    %42 = vector.extract %41[0, 0, 0] : f32 from vector<1x1x1xf32>
    %43 = vector.broadcast %42 : f32 to vector<1x8x128xf32>
    %44 = arith.mulf %38, %43 : vector<1x8x128xf32>
    %c0_13 = arith.constant 0 : index
    %c0_14 = arith.constant 0 : index
    %c0_15 = arith.constant 0 : index
    %45 = vector.load %arg3[%c0_13, %c0_14, %c0_15] : memref<1x8x128xf32, #tpu.memory_space<vmem>>, vector<1x8x128xf32>
    tpu.vector_store %arg3[%c0_13, %c0_14, %c0_15], %44 {strides = array<i32>} : memref<1x8x128xf32, #tpu.memory_space<vmem>>, vector<1x8x128xf32>,
    return
  }
  func.func @transform_0(%arg0: i32) -> (i32, i32) {
    %c0_i32 = arith.constant 0 : i32
    %c0_i32_0 = arith.constant 0 : i32
    return %arg0, %c0_i32 : i32, i32
  }
  func.func @transform_1(%arg0: i32) -> (i32, i32) {
    %c0_i32 = arith.constant 0 : i32
    %c0_i32_0 = arith.constant 0 : i32
    return %arg0, %c0_i32 : i32, i32
  }
  func.func @transform_2(%arg0: i32) -> (i32, i32, i32) {
    %c0_i32 = arith.constant 0 : i32
    %c0_i32_0 = arith.constant 0 : i32
    %c0_i32_1 = arith.constant 0 : i32
    return %arg0, %c0_i32, %c0_i32_0 : i32, i32, i32
  }
}

</mosaic_0001>

<bundles_post_ra>
// kernel: onenet_loss.3
= control target key start
LH: loop header
LB: loop body
LE: loop exit
PB: predicated region body
PF: predicated region fallthrough
CT: control target
= control target key end

     0   :  { %v230_v0 = vmov 1   ;;  %v231_v1 = vmov 0   ;;  %v232_v5 = vmov 2   ;;  %v233_v6 = vmov 3   ;;  %s365_s0 = inlined_call_operand.vmem [shape: s32[32,4], index: 0, kind: input, shape index: {}]   ;;  %s366_s1 = inlined_call_operand.vmem [shape: f32[32,128], index: 1, kind: input, shape index: {}]   ;;  %s367_s2 = inlined_call_operand.vmem [shape: f32[1,8,128], index: 2, kind: output, shape index: {}]  }
   0x1   :  { %195 = vset.pattern.permute.xlu1 %v230_v0  ;;  %194 = vset.pattern.permute.xlu0 %v231_v1  ;;  %v17_v2 = vld [vmem:[%s365_s0] sm:$0xff]  ;;  %v18_v3 = vld [vmem:[%s365_s0 + $0x8] sm:$0xff]  ;;  %v19_v4 = vld [vmem:[%s365_s0 + $0x10] sm:$0xff]  ;;  %v15_v37 = vlaneseq }
   0x2   :  { %38 = vperm.xlu1 %195, %v17_v2   ;;  %22 = vperm.xlu0 %194, %v17_v2   ;;  %v20_v7 = vld [vmem:[%s365_s0 + $0x18] sm:$0xff]  ;;  %v265_v8 = vld [vmem:[%s366_s1 + $0x8] sm:$0xff]  ;;  %v270_v9 = vld [vmem:[%s366_s1] sm:$0xff] }
   0x3   :  { %v98_v10 = vand.u32 2147483647, %v265_v8  ;;  %v97_v11 = vand.u32 2147483647, %v270_v9  ;;  %v277_v12 = vld [vmem:[%s366_s1 + $0x10] sm:$0xff]  ;;  %v283_v19 = vld [vmem:[%s366_s1 + $0x18] sm:$0xff] }
   0x4   :  { %v99_v15 = vand.u32 2147483647, %v277_v12  ;;  %v100_v21 = vand.u32 2147483647, %v283_v19  ;;  %v286_v43 = vand.u32 127, %v15_v37  ;;  %v114_v44 = vmax.f32 %v265_v8, 0.0 }
   0x5   :  { %v102_v13 = vsub.f32 0.0, %v98_v10  ;;  %v101_v14 = vsub.f32 0.0, %v97_v11  ;;  %v113_v47 = vmax.f32 %v270_v9, 0.0  ;;  %v115_v54 = vmax.f32 %v277_v12, 0.0 }
   0x6   :  { %41 = vperm.xlu1 %195, %v18_v3   ;;  %25 = vperm.xlu0 %194, %v18_v3   ;;  %v103_v18 = vsub.f32 0.0, %v99_v15  ;;  %v104_v22 = vsub.f32 0.0, %v100_v21 }
   0x7   :  { %v107_v16 = vmul.f32 1.442695, %v102_v13  ;;  %v105_v17 = vmul.f32 1.442695, %v101_v14 }
   0x8   :  { %v109_v20 = vmul.f32 1.442695, %v103_v18  ;;  %v111_v23 = vmul.f32 1.442695, %v104_v22 }
   0x9   :  { %206 = vpow2.f32 %v107_v16 }
   0xa   :  { %196 = vset.pattern.permute.xlu1 %v232_v5  ;;  %198 = vset.pattern.permute.xlu0 %v230_v0  ;;  %208 = vpow2.f32 %v105_v17 }
   0xb   :  { %61 = vperm.xlu1 %196, %v18_v3   ;;  %44 = vperm.xlu0 %198, %v19_v4   ;;  %210 = vpow2.f32 %v109_v20 }
   0xc   :  { %212 = vpow2.f32 %v111_v23  ;;  %v234_v23 = vmov 0.9  }
   0xf   :  { %197 = vset.pattern.permute.xlu1 %v231_v1  ;;  %199 = vset.pattern.permute.xlu0 %v232_v5 }
  0x10   :  { %28 = vperm.xlu1 %197, %v19_v4   ;;  %58 = vperm.xlu0 %199, %v17_v2  }
  0x14   :  { %200 = vset.pattern.permute.xlu1 %v233_v6  ;;  %64 = vperm.xlu0 %199, %v19_v4  }
  0x15   :  { %78 = vperm.xlu1 %200, %v17_v2  }
  0x16   :  { %v207_v24 = vpop.eup %206 }
  0x17   :  { %v209_v25 = vpop.eup %208  ;;  %v118_v26 = vadd.f32 1.0, %v207_v24 }
  0x18   :  { %203 = vset.pattern.permute.xlu0 %v233_v6  ;;  %v117_v29 = vadd.f32 1.0, %v209_v25  ;;  %v211_v30 = vpop.eup %210 }
  0x19   :  { %81 = vperm.xlu1 %200, %v18_v3   ;;  %84 = vperm.xlu0 %203, %v19_v4   ;;  %214 = vlog2.f32 %v118_v26  ;;  %v119_v32 = vadd.f32 1.0, %v211_v30  ;;  %v213_v36 = vpop.eup %212 }
  0x1a   :  { %216 = vlog2.f32 %v117_v29  ;;  %v120_v39 = vadd.f32 1.0, %v213_v36 }
  0x1b   :  { %218 = vlog2.f32 %v119_v32 }
  0x1c   :  { %220 = vlog2.f32 %v120_v39 }
  0x1d   :  { %201 = vset.pattern.permute.xlu1 %v231_v1 }
  0x1e   :  { %31 = vperm.xlu1 %201, %v20_v7  }
  0x22   :  { %202 = vset.pattern.permute.xlu1 %v230_v0 }
  0x23   :  { %47 = vperm.xlu1 %202, %v20_v7  }
  0x26   :  { %v215_v40 = vpop.eup %214 }
  0x27   :  { %204 = vset.pattern.permute.xlu1 %v232_v5  ;;  %v217_v42 = vpop.eup %216  ;;  %v124_v45 = vmul.f32 0.6931472, %v215_v40 }
  0x28   :  { %67 = vperm.xlu1 %204, %v20_v7   ;;  %v122_v48 = vmul.f32 0.6931472, %v217_v42  ;;  %v219_v49 = vpop.eup %218 }
  0x29   :  { %v294_v51 = vadd.f32 %v124_v45, %v114_v44  ;;  %v126_v55 = vmul.f32 0.6931472, %v219_v49  ;;  %v221_v0 = vpop.eup %220 }
  0x2a   :  { %v297_v53 = vadd.f32 %v122_v48, %v113_v47 }
  0x2b   :  { %v134_v56 = vsub.f32 %v294_v51, %v265_v8  ;;  %v131_v60 = vadd.f32 %v126_v55, %v115_v54 }
  0x2c   :  { %205 = vset.pattern.permute.xlu1 %v233_v6  ;;  %v133_v59 = vsub.f32 %v297_v53, %v270_v9  ;;  %v116_v6 = vmax.f32 %v283_v19, 0.0 }
  0x2d   :  { %87 = vperm.xlu1 %205, %v20_v7   ;;  %v135_v2 = vsub.f32 %v131_v60, %v277_v12  ;;  %v128_v7 = vmul.f32 0.6931472, %v221_v0 }
  0x2f   :  { %v132_v13 = vadd.f32 %v128_v7, %v116_v6 }
  0x31   :  { %v136_v12 = vsub.f32 %v132_v13, %v283_v19 }
  0x7d   :  { %v39_v27 = vpop.permute.xlu1 %38  ;;  %v23_v28 = vpop.permute.xlu0 %22 }
  0x7e   :  { %vm49_vm0 = vcmp.eq.s32.totalorder %v286_v43, %v39_v27  ;;  %vm33_vm1 = vcmp.eq.s32.totalorder %v286_v43, %v23_v28 }
  0x7f   :  { %vm53_vm5 = vmor %vm33_vm1, %vm49_vm0 }
  0x81   :  { %v42_v31 = vpop.permute.xlu1 %41  ;;  %v26_v33 = vpop.permute.xlu0 %25 }
  0x82   :  { %vm50_vm2 = vcmp.eq.s32.totalorder %v286_v43, %v42_v31  ;;  %vm34_vm3 = vcmp.eq.s32.totalorder %v286_v43, %v26_v33 }
  0x83   :  { %vm54_vm7 = vmor %vm34_vm3, %vm50_vm2 }
  0x86   :  { %v62_v34 = vpop.permute.xlu1 %61  ;;  %v45_v35 = vpop.permute.xlu0 %44 }
  0x87   :  { %vm70_vm4 = vcmp.eq.s32.totalorder %v286_v43, %v62_v34  ;;  %vm51_vm12 = vcmp.eq.s32.totalorder %v286_v43, %v45_v35 }
  0x88   :  { %vm74_vm9 = vmor %vm54_vm7, %vm70_vm4 }
  0x8b   :  { %v29_v38 = vpop.permute.xlu1 %28  ;;  %v59_v41 = vpop.permute.xlu0 %58 }
  0x8c   :  { %vm69_vm8 = vcmp.eq.s32.totalorder %v286_v43, %v59_v41  ;;  %vm35_vm13 = vcmp.eq.s32.totalorder %v286_v43, %v29_v38 }
  0x8d   :  { %vm73_vm14 = vmor %vm53_vm5, %vm69_vm8 }
  0x8e   :  { %vm55_vm2 = vmor %vm35_vm13, %vm51_vm12 }
  0x8f   :  { %v65_v50 = vpop.permute.xlu0 %64 }
  0x90   :  { %v79_v46 = vpop.permute.xlu1 %78  ;;  %vm71_vm15 = vcmp.eq.s32.totalorder %v286_v43, %v65_v50 }
  0x91   :  { %vm89_vm10 = vcmp.eq.s32.totalorder %v286_v43, %v79_v46  ;;  %vm75_vm3 = vmor %vm55_vm2, %vm71_vm15 }
  0x92   :  { %vm314_vm0 = vmor %vm73_vm14, %vm89_vm10 }
  0x93   :  { %v141_v1 = vsel %vm314_vm0, %v297_v53, %v133_v59  ;;  %v137_v26 = vsel %vm314_vm0, %v133_v59, %v297_v53  ;;  %v157_v27 = vsel %vm314_vm0, 0.1, %v234_v23 }
  0x94   :  { %v82_v52 = vpop.permute.xlu1 %81  ;;  %v85_v58 = vpop.permute.xlu0 %84  ;;  %v145_v8 = vmul.f32 -0.2, %v141_v1  ;;  %v161_v30 = vmul.f32 %v157_v27, %v137_v26 }
  0x95   :  { %vm90_vm6 = vcmp.eq.s32.totalorder %v286_v43, %v82_v52  ;;  %vm91_vm1 = vcmp.eq.s32.totalorder %v286_v43, %v85_v58 }
  0x96   :  { %vm305_vm11 = vmor %vm74_vm9, %vm90_vm6  ;;  %v149_v14 = vmul.f32 1.442695, %v145_v8 }
  0x97   :  { %v142_v63 = vsel %vm305_vm11, %v294_v51, %v134_v56  ;;  %vm326_vm4 = vmor %vm75_vm3, %vm91_vm1  ;;  %v138_v19 = vsel %vm305_vm11, %v134_v56, %v294_v51  ;;  %v158_v24 = vsel %vm305_vm11, 0.1, %v234_v23 }
  0x98   :  { %v146_v3 = vmul.f32 -0.2, %v142_v63  ;;  %v143_v9 = vsel %vm326_vm4, %v131_v60, %v135_v2  ;;  %v162_v28 = vmul.f32 %v158_v24, %v138_v19  ;;  %v139_v32 = vsel %vm326_vm4, %v135_v2, %v131_v60 }
  0x99   :  { %v32_v61 = vpop.permute.xlu1 %31  ;;  %v147_v15 = vmul.f32 -0.2, %v143_v9  ;;  %v159_v33 = vsel %vm326_vm4, 0.1, %v234_v23 }
  0x9a   :  { %v151_v10 = vmul.f32 1.442695, %v146_v3  ;;  %vm36_vm7 = vcmp.eq.s32.totalorder %v286_v43, %v32_v61  ;;  %v163_v38 = vmul.f32 %v159_v33, %v139_v32 }
  0x9b   :  { %v153_v16 = vmul.f32 1.442695, %v147_v15 }
  0x9c   :  { %222 = vpow2.f32 %v151_v10 }
  0x9d   :  { %224 = vpow2.f32 %v149_v14 }
  0x9e   :  { %v48_v5 = vpop.permute.xlu1 %47  ;;  %226 = vpow2.f32 %v153_v16 }
  0x9f   :  { %vm52_vm5 = vcmp.eq.s32.totalorder %v286_v43, %v48_v5 }
  0xa0   :  { %vm56_vm8 = vmor %vm36_vm7, %vm52_vm5 }
  0xa3   :  { %v68_v11 = vpop.permute.xlu1 %67 }
  0xa4   :  { %vm72_vm6 = vcmp.eq.s32.totalorder %v286_v43, %v68_v11 }
  0xa5   :  { %vm76_vm9 = vmor %vm56_vm8, %vm72_vm6 }
  0xa8   :  { %v88_v17 = vpop.permute.xlu1 %87 }
  0xa9   :  { %vm92_vm10 = vcmp.eq.s32.totalorder %v286_v43, %v88_v17  ;;  %v223_v25 = vpop.eup %222 }
  0xaa   :  { %vm338_vm12 = vmor %vm76_vm9, %vm92_vm10  ;;  %v225_v29 = vpop.eup %224  ;;  %v166_v31 = vmul.f32 %v223_v25, %v162_v28 }
  0xab   :  { %v144_v20 = vsel %vm338_vm12, %v132_v13, %v136_v12  ;;  %v165_v34 = vmul.f32 %v225_v29, %v161_v30  ;;  %v227_v35 = vpop.eup %226  ;;  %v140_v36 = vsel %vm338_vm12, %v136_v12, %v132_v13  ;;  %v160_v37 = vsel %vm338_vm12, 0.1, %v234_v23 }
  0xac   :  { %v148_v21 = vmul.f32 -0.2, %v144_v20  ;;  %v164_v40 = vmul.f32 %v160_v37, %v140_v36  ;;  %v167_v41 = vmul.f32 %v227_v35, %v163_v38 }
  0xad   :  { %v169_v39 = vadd.f32 %v166_v31, %v165_v34 }
  0xae   :  { %v155_v22 = vmul.f32 1.442695, %v148_v21 }
  0xaf   :  { %v170_v44 = vadd.f32 %v169_v39, %v167_v41 }
  0xb0   :  { %228 = vpow2.f32 %v155_v22 }
  0xbd   :  { %v229_v42 = vpop.eup %228 }
  0xbe   :  { %v168_v43 = vmul.f32 %v229_v42, %v164_v40 }
  0xc0   :  { %v171_v45 = vadd.f32 %v170_v44, %v168_v43 }
  0xc2   :  { %172 = vadd.xlane.f32.xlu0 %v171_v45 }
 0x14b   :  { %v173_v46 = vpop.xlane.xlu0 %172 }
 0x14c   :  { %v174_v47 = vrot.slane %v173_v46, 4 }
 0x14e   :  { %v175_v48 = vadd.f32 %v174_v47, %v173_v46 }
 0x150   :  { %v176_v49 = vrot.slane %v175_v48, 2 }
 0x152   :  { %v177_v50 = vadd.f32 %v176_v49, %v175_v48 }
 0x154   :  { %v178_v51 = vrot.slane %v177_v50, 1 }
 0x156   :  { %v179_v52 = vadd.f32 %v178_v51, %v177_v50 }
 0x158   :  { %187 = vpush %v179_v52 }
 0x189   :  { %s188_s1 = spop %187 }
 0x18a   :  { %v181_v53 = vstv %s188_s1 }
 0x18b   :  { %182 = vst [vmem:[%s367_s2] sm:$0xff] %v181_v53 }

// kernel: onenet_loss.2
= control target key start
LH: loop header
LB: loop body
LE: loop exit
PB: predicated region body
PF: predicated region fallthrough
CT: control target
= control target key end

     0   :  { %11 = vsyncpa [#allocation3], 0  ;;  %s2863_s0 = inlined_call_operand.vmem [shape: f32[2,64,32], index: 0, kind: input, shape index: {}]   ;;  %s2864_s1 = inlined_call_operand.vmem [shape: f32[2,64,4], index: 1, kind: input, shape index: {}]   ;;  %s2865_s2 = inlined_call_operand.vmem [shape: s32[2,1,128], index: 2, kind: input, shape index: {}]   ;;  %s2866_s3 = inlined_call_operand.vmem [shape: f32[2,4,128], index: 3, kind: input, shape index: {}]   ;;  %s2867_s4 = inlined_call_operand.hbm [shape: f32[2,1,8,128], index: 4, kind: output, shape index: {0}]   ;;  %s2868_s5 = inlined_call_operand.vmem [shape: s32[2,1,8,128], index: 5, kind: output, shape index: {1}]  }
   0x1   :  { %13 = vsyncpa [#allocation3 + $0x1], 0  ;;  %s1851_s18 = smov 0   ;;  %s1853_s19 = smov 0  }
   0x2   :  { %s1855_s20 = smov 0   ;;  %s1857_s21 = smov 0  }
   0x3   :  { %s1859_s22 = smov 0   ;;  %s1861_s23 = smov 0  }
   0x4 LB: > { %s1493_s24 = sadd.s32 4294967295, %s1811_s23   ;;  %s1494_s25 = sadd.s32 4294967294, %s1811_s23   ;;  %s1811_s23 = sphi %s1861_s23, %s19_s23   ;;  %s1807_s22 = sphi %s1859_s22, %s2928_s22   ;;  %s1803_s21 = sphi %s1857_s21, %s2927_s21   ;;  %s1799_s20 = sphi %s1855_s20, %s2926_s20   ;;  %s1795_s19 = sphi %s1853_s19, %s2925_s19   ;;  %s1791_s18 = sphi %s1851_s18, %s2924_s18  }
   0x5   : > { %s31_s26 = sadd.s32 1, %s1807_s22  ;;  %s148_s27 = sadd.s32 1, %s1799_s20 }
   0x6   : > { %p33_p0 = scmp.ge.s32.totalorder %s31_s26, 2  ;;  %p158_p1 = scmp.ne.s32.totalorder %s1799_s20, %s1795_s19 }
   0x7   : > { %p159_p2 = scmp.eq.s32.totalorder %s1493_s24, 1  ;;  %p164_p3 = scmp.ne.s32.totalorder %s1795_s19, %s1791_s18 }
   0x8   : > { %s2930_s26 = smov (%p33_p0, %s31_s26), 0  ;;  %p165_p5 = scmp.eq.s32.totalorder %s1494_s25, 1 }
   0x9   : > { %p1891_p4 = por %p159_p2, %p158_p1  ;;  %s143_s29 = ssub.s32 %s1807_s22, %s2930_s26 }
   0xa   : > { %p1497_p6 = scmp.ge.s32.totalorder %s1811_s23, 1  ;;  %p146_p7 = scmp.eq.s32.totalorder %s143_s29, 0 }
   0xb   : > { %p1898_p8 = por %p165_p5, %p164_p3  ;;  %p250_p9 = scmp.lt.s32.totalorder %s1811_s23, 3 }
   0xc   : > { %s1904_s6 = scalar_select %p146_p7, %s1799_s20, %s148_s27  }
   0xd   : > { %p251_p10 = pnand %p1497_p6, %p250_p9 }
   0xf   : > { %254 = sbr.rel (%p251_p10) target bundleno = 483 (0x1e3), region = 36 }
  0x14   : > { %p306_p11 = scmp.lt.s32.totalorder %s1803_s21, 1  ;;  %v357_v0 = vlaneseq  ;;  %v1813_v1 = vmov 0   ;;  %s1814_s24 = smov 2   ;;  %v1815_v19 = vmov 1.0   ;;  %vm1118_vm4 = vcmask 261120  }
  0x15   : > { %1631 = vset.pattern.permute.xlu1 %v1813_v1  ;;  %1630 = vset.pattern.permute.xlu0 %v1813_v1  ;;  %s1817_s25 = smov 127   ;;  %s293_s10 = sand.u32 1, %s1795_s19  }
  0x16   : > { %s1908_s7 = scalar_select %p306_p11, %s1803_s21, 1  ;;  %v1910_v2 = vshrl.u32 %v357_v0, 7  ;;  %v1816_v0 = vmov 1  }
  0x17   : > { %s1523_s12 = sshll.u32 %s1803_s21, 7  ;;  %s1325_s21 = scalar_lea.sflag [#allocation3], %s293_s10 }
  0x18   : > { %2879 = vst [vmem:[#allocation5_spill] sm:$0xff] %v1910_v2  ;;  %s1526_s8 = sshll.u32 %s1908_s7, 6  ;;  %s327_s14 = scalar_lea.vmem %s2865_s2, %s1908_s7  ;;  %v1929_v5 = vadd.s32 24, %v1910_v2  ;;  %v1941_v6 = vadd.s32 16, %v1910_v2  ;;  %v1957_v11 = vadd.s32 8, %v1910_v2 }
  0x19   : > { %s1916_s11 = scalar_lea.vmem %s2864_s1, %s1526_s8  ;;  %s1934_s17 = scalar_lea.vmem %s2863_s0, %s1526_s8  ;;  %v1949_v9 = vld [vmem:[%s327_s14] ss:$0 sm:$0xff] }
  0x1a   : > { %v1919_v3 = vld [vmem:[%s1916_s11] sm:$0xff]  ;;  %v1922_v4 = vld [vmem:[%s1916_s11 + $0x10] sm:$0xff]  ;;  %2880 = vst [vmem:[#allocation6_spill] sm:$0xff] %v1929_v5  ;;  %2881 = vst [vmem:[#allocation7_spill] sm:$0xff] %v1941_v6  ;;  %vm369_vm0 = vcmp.eq.s32.totalorder %v1929_v5, %v1949_v9  ;;  %vm368_vm1 = vcmp.eq.s32.totalorder %v1941_v6, %v1949_v9  ;;  %vm367_vm2 = vcmp.eq.s32.totalorder %v1957_v11, %v1949_v9  ;;  %s1503_s27 = sshll.u32 %s1908_s7, 2 }
  0x1b   : > { %858 = vrot.lane.b32.xlu0 %v1919_v3, %s1814_s24  ;;  %862 = vrot.lane.b32.xlu1 %v1922_v4, %s1814_s24  ;;  %v1944_v7 = vld [vmem:[%s1916_s11 + $0x8] sm:$0xff]  ;;  %v1947_v8 = vld [vmem:[%s1916_s11 + $0x18] sm:$0xff]  ;;  %2882 = vst [vmem:[#allocation8_spill] sm:$0xff] %v1957_v11  ;;  %vm366_vm3 = vcmp.eq.s32.totalorder %v1910_v2, %v1949_v9  ;;  %s331_s9 = scalar_lea.vmem %s2866_s3, %s1503_s27 }
  0x1c   : > { %v1952_v10 = vld [vmem:[%s1934_s17] sm:$0xff]  ;;  %v1960_v12 = vld [vmem:[%s1934_s17 + $0x8] sm:$0xff]  ;;  %1540 = vmatprep.subr.msk.mxu0 %vm369_vm0, %v1815_v19  ;;  %1560 = vmatprep.subr.msk.mxu1 %vm369_vm0, %v1815_v19  ;;  %v1997_v24 = vld [vmem:[%s1934_s17 + $0x30] sm:$0xff] }
  0x1d   : > { %v1963_v13 = vld [vmem:[%s1934_s17 + $0x20] sm:$0xff]  ;;  %v1966_v14 = vld [vmem:[%s1934_s17 + $0x28] sm:$0xff]  ;;  %v378_v15 = vand.u32 2147483647, %v1952_v10  ;;  %v379_v16 = vand.u32 2147483647, %v1960_v12  ;;  %1541 = vmatpush3.msk.msra.mxu0 %vm369_vm0, %v1815_v19  ;;  %1564 = vmatpush3.msk.msra.mxu1 %vm369_vm0, %v1815_v19 }
  0x1e   : > { %v1977_v17 = vld [vmem:[%s1916_s11 + $0x20] sm:$0xff]  ;;  %v1980_v18 = vld [vmem:[%s1916_s11 + $0x28] sm:$0xff]  ;;  %v382_v20 = vand.u32 2147483647, %v1963_v13  ;;  %v383_v21 = vand.u32 2147483647, %v1966_v14  ;;  %1542 = vmatprep.subr.msk.mxu0 %vm368_vm1, %v1815_v19  ;;  %1561 = vmatprep.subr.msk.mxu1 %vm368_vm1, %v1815_v19 }
  0x1f   : > { %860 = vrot.lane.b32.xlu0 %v1944_v7, %s1814_s24  ;;  %864 = vrot.lane.b32.xlu1 %v1947_v8, %s1814_s24  ;;  %v386_v22 = vsub.f32 0.0, %v378_v15  ;;  %v387_v23 = vsub.f32 0.0, %v379_v16  ;;  %v2000_v25 = vld [vmem:[%s1934_s17 + $0x38] sm:$0xff]  ;;  %v2003_v26 = vld [vmem:[%s1916_s11 + $0x30] sm:$0xff]  ;;  %v384_v29 = vand.u32 2147483647, %v1997_v24 }
  0x20   : > { %v390_v27 = vsub.f32 0.0, %v382_v20  ;;  %v391_v28 = vsub.f32 0.0, %v383_v21  ;;  %v2015_v30 = vld [vmem:[%s1934_s17 + $0x10] sm:$0xff]  ;;  %v2018_v31 = vld [vmem:[%s1934_s17 + $0x18] sm:$0xff]  ;;  %v385_v34 = vand.u32 2147483647, %v2000_v25  ;;  %1543 = vmatpush3.msk.msra.mxu0 %vm368_vm1, %v1815_v19  ;;  %1565 = vmatpush3.msk.msra.mxu1 %vm368_vm1, %v1815_v19  ;;  %s2783_s17 = scalar_lea.hbm %s2867_s4, %s1523_s12 }
  0x21   : > { %v394_v32 = vmul.f32 1.442695, %v386_v22  ;;  %v396_v33 = vmul.f32 1.442695, %v387_v23  ;;  %v2026_v35 = vld [vmem:[%s1916_s11 + $0x38] sm:$0xff]  ;;  %v392_v38 = vsub.f32 0.0, %v384_v29  ;;  %1544 = vmatprep.subr.msk.mxu0 %vm367_vm2, %v1815_v19  ;;  %1562 = vmatprep.subr.msk.mxu1 %vm367_vm2, %v1815_v19 }
  0x22   : > { %v402_v36 = vmul.f32 1.442695, %v390_v27  ;;  %v404_v37 = vmul.f32 1.442695, %v391_v28  ;;  %v393_v39 = vsub.f32 0.0, %v385_v34  ;;  %1545 = vmatpush3.msk.msra.mxu0 %vm367_vm2, %v1815_v19  ;;  %1566 = vmatpush3.msk.msra.mxu1 %vm367_vm2, %v1815_v19  ;;  %v410_v1 = vmax.f32 %v1952_v10, 0.0 }
  0x23   : > { %866 = vrot.lane.b32.xlu0 %v1977_v17, %s1814_s24  ;;  %868 = vrot.lane.b32.xlu1 %v1980_v18, %s1814_s24  ;;  %1639 = vpow2.f32 %v394_v32  ;;  %v380_v40 = vand.u32 2147483647, %v2015_v30  ;;  %v406_v41 = vmul.f32 1.442695, %v392_v38  ;;  %v381_v42 = vand.u32 2147483647, %v2018_v31 }
  0x24   : > { %1641 = vpow2.f32 %v396_v33  ;;  %v408_v43 = vmul.f32 1.442695, %v393_v39  ;;  %1546 = vmatprep.subr.msk.mxu0 %vm366_vm3, %v1815_v19  ;;  %1563 = vmatprep.subr.msk.mxu1 %vm366_vm3, %v1815_v19  ;;  %v411_v15 = vmax.f32 %v1960_v12, 0.0  ;;  %v414_v20 = vmax.f32 %v1963_v13, 0.0  ;;  %s1498_s11 = sshll.u32 %s293_s10, 3 }
  0x25   : > { %1643 = vpow2.f32 %v402_v36  ;;  %v388_v44 = vsub.f32 0.0, %v380_v40  ;;  %v389_v45 = vsub.f32 0.0, %v381_v42  ;;  %1547 = vmatpush3.msk.msra.mxu0 %vm366_vm3, %v1815_v19  ;;  %1567 = vmatpush3.msk.msra.mxu1 %vm366_vm3, %v1815_v19  ;;  %v415_v23 = vmax.f32 %v1966_v14, 0.0  ;;  %s295_s13 = scalar_lea.vmem [#allocation2], %s1498_s11 }
  0x26   : > { %1645 = vpow2.f32 %v404_v37  ;;  %v416_v32 = vmax.f32 %v1997_v24, 0.0  ;;  %v417_v33 = vmax.f32 %v2000_v25, 0.0  ;;  %v412_v38 = vmax.f32 %v2015_v30, 0.0  ;;  %s1346_s14 = sshll.u32 %s295_s13, 4  ;;  %s2785_s14 = int_to_ptr.vmem [resolvable:$true] %s1346_s14 }
  0x27   : > { %870 = vrot.lane.b32.xlu0 %v2003_v26, %s1814_s24  ;;  %872 = vrot.lane.b32.xlu1 %v2026_v35, %s1814_s24  ;;  %1647 = vpow2.f32 %v406_v41  ;;  %v398_v46 = vmul.f32 1.442695, %v388_v44  ;;  %v400_v47 = vmul.f32 1.442695, %v389_v45  ;;  %v413_v39 = vmax.f32 %v2018_v31, 0.0  ;;  %s1735_s24 = scalar_lea.vmem %s2785_s14, 128 }
  0x28   : > { %1649 = vpow2.f32 %v408_v43  ;;  %p1736_p12 = scmp.ne.s32.totalorder %s2785_s14, %s1735_s24 }
  0x29   : > { %1651 = vpow2.f32 %v398_v46 }
  0x2a   : > { %1653 = vpow2.f32 %v400_v47  ;;  %p1737_p13 = pnand %p1736_p12, %p1891_p4 }
  0x2b   : > { %553 = vperm.xlu1 %1631, %v1944_v7   ;;  %548 = vperm.xlu0 %1630, %v1919_v3  }
  0x2c   : > { %p1738_p0 = pneg %p1737_p13 }
  0x2f   : > { %558 = vperm.xlu1 %1631, %v1922_v4   ;;  %563 = vperm.xlu0 %1630, %v1947_v8  }
  0x30   : > { %v1640_v48 = vpop.eup %1639 }
  0x31   : > { %v1642_v49 = vpop.eup %1641  ;;  %v418_v50 = vadd.f32 1.0, %v1640_v48 }
  0x32   : > { %v1644_v51 = vpop.eup %1643  ;;  %v419_v52 = vadd.f32 1.0, %v1642_v49 }
  0x33   : > { %568 = vperm.xlu1 %1631, %v1977_v17   ;;  %573 = vperm.xlu0 %1630, %v1980_v18   ;;  %v1646_v53 = vpop.eup %1645  ;;  %1655 = vlog2.f32 %v418_v50  ;;  %v422_v54 = vadd.f32 1.0, %v1644_v51 }
  0x34   : > { %v1648_v55 = vpop.eup %1647  ;;  %1657 = vlog2.f32 %v419_v52  ;;  %v423_v56 = vadd.f32 1.0, %v1646_v53 }
  0x35   : > { %v1650_v57 = vpop.eup %1649  ;;  %1659 = vlog2.f32 %v422_v54  ;;  %v424_v58 = vadd.f32 1.0, %v1648_v55 }
  0x36   : > { %v1652_v59 = vpop.eup %1651  ;;  %1661 = vlog2.f32 %v423_v56  ;;  %v425_v60 = vadd.f32 1.0, %v1650_v57 }
  0x37   : > { %578 = vperm.xlu1 %1631, %v2003_v26   ;;  %583 = vperm.xlu0 %1630, %v2026_v35   ;;  %v1654_v61 = vpop.eup %1653  ;;  %1663 = vlog2.f32 %v424_v58  ;;  %v420_v62 = vadd.f32 1.0, %v1652_v59 }
  0x38   : > { %1665 = vlog2.f32 %v425_v60  ;;  %v421_v63 = vadd.f32 1.0, %v1654_v61 }
  0x39   : > { %1667 = vlog2.f32 %v420_v62 }
  0x3a   : > { %1669 = vlog2.f32 %v421_v63 }
  0x3b   : > { %1632 = vset.pattern.permute.xlu1 %v1816_v0  ;;  %1633 = vset.pattern.permute.xlu0 %v1816_v0 }
  0x3c   : > { %607 = vperm.xlu1 %1632, %v1919_v3   ;;  %611 = vperm.xlu0 %1633, %v1944_v7  }
  0x40   : > { %615 = vperm.xlu1 %1632, %v1922_v4   ;;  %v1656_v9 = vpop.eup %1655 }
  0x41   : > { %v1658_v16 = vpop.eup %1657  ;;  %v427_v19 = vmul.f32 0.6931472, %v1656_v9 }
  0x42   : > { %v1660_v21 = vpop.eup %1659  ;;  %v429_v22 = vmul.f32 0.6931472, %v1658_v16 }
  0x43   : > { %v1662_v27 = vpop.eup %1661  ;;  %v2082_v28 = vadd.f32 %v427_v19, %v410_v1  ;;  %v435_v29 = vmul.f32 0.6931472, %v1660_v21 }
  0x44   : > { %619 = vperm.xlu1 %1632, %v1947_v8   ;;  %v1664_v34 = vpop.eup %1663  ;;  %v2086_v36 = vadd.f32 %v429_v22, %v411_v15  ;;  %v437_v37 = vmul.f32 0.6931472, %v1662_v27 }
  0x45   : > { %v1666_v40 = vpop.eup %1665  ;;  %v2092_v41 = vsub.f32 %v2082_v28, %v1952_v10  ;;  %v458_v42 = vmul.f32 -0.2, %v2082_v28  ;;  %v2095_v43 = vadd.f32 %v435_v29, %v414_v20  ;;  %v439_v44 = vmul.f32 0.6931472, %v1664_v34 }
  0x46   : > { %v2099_v45 = vsub.f32 %v2086_v36, %v1960_v12  ;;  %v459_v46 = vmul.f32 -0.2, %v2086_v36  ;;  %v2102_v47 = vadd.f32 %v437_v37, %v415_v23  ;;  %v441_v48 = vmul.f32 0.6931472, %v1666_v40  ;;  %v1668_v52 = vpop.eup %1667 }
  0x47   : > { %v466_v49 = vmul.f32 1.442695, %v458_v42  ;;  %v498_v50 = vmul.f32 -0.2, %v2092_v41  ;;  %v2107_v10 = vsub.f32 %v2095_v43, %v1963_v13  ;;  %v462_v51 = vmul.f32 -0.2, %v2095_v43  ;;  %v1670_v56 = vpop.eup %1669 }
  0x48   : > { %v468_v53 = vmul.f32 1.442695, %v459_v46  ;;  %v499_v54 = vmul.f32 -0.2, %v2099_v45  ;;  %v2113_v12 = vsub.f32 %v2102_v47, %v1966_v14  ;;  %v463_v55 = vmul.f32 -0.2, %v2102_v47 }
  0x49   : > { %1671 = vpow2.f32 %v466_v49  ;;  %v506_v57 = vmul.f32 1.442695, %v498_v50  ;;  %v474_v58 = vmul.f32 1.442695, %v462_v51  ;;  %v502_v59 = vmul.f32 -0.2, %v2107_v10 }
  0x4a   : > { %1673 = vpow2.f32 %v468_v53  ;;  %v508_v13 = vmul.f32 1.442695, %v499_v54  ;;  %v476_v60 = vmul.f32 1.442695, %v463_v55  ;;  %v503_v61 = vmul.f32 -0.2, %v2113_v12 }
  0x4b   : > { %1675 = vpow2.f32 %v506_v57  ;;  %v514_v62 = vmul.f32 1.442695, %v502_v59  ;;  %v2118_v63 = vadd.f32 %v439_v44, %v416_v32  ;;  %v2120_v0 = vadd.f32 %v441_v48, %v417_v33 }
  0x4c   : > { %1677 = vpow2.f32 %v508_v13  ;;  %v516_v14 = vmul.f32 1.442695, %v503_v61  ;;  %v431_v1 = vmul.f32 0.6931472, %v1668_v52  ;;  %v433_v9 = vmul.f32 0.6931472, %v1670_v56 }
  0x4d   : > { %1679 = vpow2.f32 %v474_v58  ;;  %v2124_v15 = vsub.f32 %v2118_v63, %v1997_v24  ;;  %v464_v16 = vmul.f32 -0.2, %v2118_v63  ;;  %v2129_v19 = vsub.f32 %v2120_v0, %v2000_v25 }
  0x4e   : > { %1681 = vpow2.f32 %v514_v62  ;;  %v465_v20 = vmul.f32 -0.2, %v2120_v0  ;;  %v2132_v21 = vadd.f32 %v431_v1, %v412_v38  ;;  %v2134_v22 = vadd.f32 %v433_v9, %v413_v39 }
  0x4f   : > { %1683 = vpow2.f32 %v476_v60  ;;  %v478_v23 = vmul.f32 1.442695, %v464_v16  ;;  %v504_v27 = vmul.f32 -0.2, %v2124_v15  ;;  %v505_v24 = vmul.f32 -0.2, %v2129_v19 }
  0x50   : > { %1685 = vpow2.f32 %v516_v14  ;;  %v480_v29 = vmul.f32 1.442695, %v465_v20  ;;  %v2140_v32 = vsub.f32 %v2132_v21, %v2015_v30  ;;  %v460_v25 = vmul.f32 -0.2, %v2132_v21 }
  0x51   : > { %1687 = vpow2.f32 %v478_v23  ;;  %v518_v33 = vmul.f32 1.442695, %v504_v27  ;;  %v520_v34 = vmul.f32 1.442695, %v505_v24  ;;  %v2145_v37 = vsub.f32 %v2134_v22, %v2018_v31 }
  0x52   : > { %1689 = vpow2.f32 %v480_v29  ;;  %v470_v38 = vmul.f32 1.442695, %v460_v25  ;;  %v500_v39 = vmul.f32 -0.2, %v2140_v32  ;;  %v461_v40 = vmul.f32 -0.2, %v2134_v22 }
  0x53   : > { %1691 = vpow2.f32 %v518_v33  ;;  %v501_v42 = vmul.f32 -0.2, %v2145_v37 }
  0x54   : > { %1693 = vpow2.f32 %v520_v34  ;;  %v510_v30 = vmul.f32 1.442695, %v500_v39  ;;  %v472_v44 = vmul.f32 1.442695, %v461_v40 }
  0x55   : > { %1695 = vpow2.f32 %v470_v38  ;;  %v512_v46 = vmul.f32 1.442695, %v501_v42 }
  0x56   : > { %v1672_v48 = vpop.eup %1671  ;;  %1697 = vpow2.f32 %v510_v30 }
  0x57   : > { %v1674_v49 = vpop.eup %1673  ;;  %v482_v50 = vmul.f32 0.1, %v1672_v48  ;;  %1699 = vpow2.f32 %v472_v44 }
  0x58   : > { %v1676_v31 = vpop.eup %1675  ;;  %v483_v51 = vmul.f32 0.1, %v1674_v49  ;;  %1701 = vpow2.f32 %v512_v46 }
  0x59   : > { %v1678_v52 = vpop.eup %1677  ;;  %v490_v53 = vmul.f32 %v482_v50, %v2092_v41  ;;  %v522_v54 = vmul.f32 0.9, %v1676_v31 }
  0x5a   : > { %v1680_v55 = vpop.eup %1679  ;;  %v491_v56 = vmul.f32 %v483_v51, %v2099_v45  ;;  %v523_v57 = vmul.f32 0.9, %v1678_v52 }
  0x5b   : > { %v1682_v58 = vpop.eup %1681  ;;  %v530_v59 = vmul.f32 %v522_v54, %v2082_v28  ;;  %v486_v13 = vmul.f32 0.1, %v1680_v55 }
  0x5c   : > { %v1684_v60 = vpop.eup %1683  ;;  %v531_v61 = vmul.f32 %v523_v57, %v2086_v36  ;;  %v526_v62 = vmul.f32 0.9, %v1682_v58 }
  0x5d   : > { %v1686_v14 = vpop.eup %1685  ;;  %v538_v1 = vsub.f32 %v490_v53, %v530_v59  ;;  %v494_v9 = vmul.f32 %v486_v13, %v2107_v10  ;;  %v487_v16 = vmul.f32 0.1, %v1684_v60 }
  0x5e   : > { %v1688_v41 = vpop.eup %1687  ;;  %v539_v20 = vsub.f32 %v491_v56, %v531_v61  ;;  %v534_v23 = vmul.f32 %v526_v62, %v2095_v43  ;;  %v527_v45 = vmul.f32 0.9, %v1686_v14 }
  0x5f   : > { %v1690_v27 = vpop.eup %1689  ;;  %1548 = vmatprep.mubr.msk.f32.mxu0 %vm1118_vm4, %v538_v1  ;;  %v495_v28 = vmul.f32 %v487_v16, %v2113_v12  ;;  %v488_v24 = vmul.f32 0.1, %v1688_v41  ;;  %v1818_v41 = vmov 3  }
  0x60   : > { %v1692_v29 = vpop.eup %1691  ;;  %1549 = vmatmul.mubr.msk.f32.vlgmr.msra.gmra.mxu0 %vm1118_vm4, %v539_v20  ;;  %v542_v36 = vsub.f32 %v494_v9, %v534_v23  ;;  %v535_v25 = vmul.f32 %v527_v45, %v2102_v47  ;;  %v489_v33 = vmul.f32 0.1, %v1690_v27  ;;  %v1819_v23 = vmov 2  }
  0x61   : > { %v1694_v10 = vpop.eup %1693  ;;  %v496_v34 = vmul.f32 %v488_v24, %v2124_v15  ;;  %v528_v38 = vmul.f32 0.9, %v1692_v29  ;;  %v588_v45 = vsub.s32 0, %v1910_v2  ;;  %v640_v29 = vsub.s32 1, %v1910_v2 }
  0x62   : > { %v1696_v39 = vpop.eup %1695  ;;  %1554 = vmatprep.mubr.msk.f32.mxu1 %vm1118_vm4, %v542_v36  ;;  %v543_v43 = vsub.f32 %v495_v28, %v535_v25  ;;  %v497_v40 = vmul.f32 %v489_v33, %v2129_v19  ;;  %v529_v42 = vmul.f32 0.9, %v1694_v10  ;;  %v2224_v28 = vld [vmem:[%s331_s9] sm:$0xf] }
  0x63   : > { %v1698_v12 = vpop.eup %1697  ;;  %v536_v30 = vmul.f32 %v528_v38, %v2118_v63  ;;  %v484_v44 = vmul.f32 0.1, %v1696_v39  ;;  %v2229_v24 = vrot.slane %v2224_v28, %v588_v45  ;;  %v2240_v33 = vrot.slane %v2224_v28, %v640_v29 }
  0x64   : > { %v1700_v46 = vpop.eup %1699  ;;  %1555 = vmatmul.mubr.msk.f32.vlgmr.msra.gmra.mxu1 %vm1118_vm4, %v543_v43  ;;  %v537_v47 = vmul.f32 %v529_v42, %v2120_v0  ;;  %v524_v48 = vmul.f32 0.9, %v1698_v12 }
  0x65   : > { %v1702_v49 = vpop.eup %1701  ;;  %v544_v15 = vsub.f32 %v496_v34, %v536_v30  ;;  %v492_v50 = vmul.f32 %v484_v44, %v2140_v32  ;;  %v485_v31 = vmul.f32 0.1, %v1700_v46 }
  0x66   : > { %v545_v51 = vsub.f32 %v497_v40, %v537_v47  ;;  %v532_v52 = vmul.f32 %v524_v48, %v2132_v21  ;;  %v525_v19 = vmul.f32 0.9, %v1702_v49 }
  0x67   : > { %1557 = vmatprep.mubr.msk.f32.mxu1 %vm1118_vm4, %v544_v15  ;;  %v493_v63 = vmul.f32 %v485_v31, %v2145_v37 }
  0x68   : > { %1558 = vmatmul.mubr.msk.f32.gmra.mxu1 %vm1118_vm4, %v545_v51  ;;  %v540_v53 = vsub.f32 %v492_v50, %v532_v52  ;;  %v533_v54 = vmul.f32 %v525_v19, %v2134_v22 }
  0x6a   : > { %1551 = vmatprep.mubr.msk.f32.mxu0 %vm1118_vm4, %v540_v53  ;;  %v541_v0 = vsub.f32 %v493_v63, %v533_v54 }
  0x6c   : > { %1552 = vmatmul.mubr.msk.f32.gmra.mxu0 %vm1118_vm4, %v541_v0 }
  0x8d   : > { %v859_v32 = vpop.permute.xlu0 %858  ;;  %v863_v55 = vpop.permute.xlu1 %862 }
  0x8e   : > { %v2175_v56 = vsub.f32 %v1919_v3, %v859_v32  ;;  %v2179_v21 = vsub.f32 %v1922_v4, %v863_v55 }
  0x90   : > { %898 = vrot.lane.b32.xlu0 %v2175_v56, %s1817_s25 }
  0x91   : > { %v861_v37 = vpop.permute.xlu0 %860  ;;  %v865_v57 = vpop.permute.xlu1 %864 }
  0x92   : > { %v2182_v22 = vsub.f32 %v1944_v7, %v861_v37  ;;  %v2187_v58 = vsub.f32 %v1947_v8, %v865_v57 }
  0x94   : > { %902 = vrot.lane.b32.xlu0 %v2179_v21, %s1817_s25  ;;  %900 = vrot.lane.b32.xlu1 %v2182_v22, %s1817_s25 }
  0x95   : > { %v867_v59 = vpop.permute.xlu0 %866  ;;  %v869_v13 = vpop.permute.xlu1 %868 }
  0x96   : > { %v2190_v60 = vsub.f32 %v1977_v17, %v867_v59  ;;  %v2195_v61 = vsub.f32 %v1980_v18, %v869_v13 }
  0x98   : > { %904 = vrot.lane.b32.xlu1 %v2187_v58, %s1817_s25  ;;  %906 = vrot.lane.b32.xlu0 %v2190_v60, %s1817_s25 }
  0x99   : > { %v871_v62 = vpop.permute.xlu0 %870  ;;  %v873_v14 = vpop.permute.xlu1 %872 }
  0x9a   : > { %v2198_v1 = vsub.f32 %v2003_v26, %v871_v62  ;;  %v2203_v9 = vsub.f32 %v2026_v35, %v873_v14 }
  0x9c   : > { %908 = vrot.lane.b32.xlu1 %v2195_v61, %s1817_s25  ;;  %910 = vrot.lane.b32.xlu0 %v2198_v1, %s1817_s25 }
  0xa0   : > { %912 = vrot.lane.b32.xlu1 %v2203_v9, %s1817_s25  ;;  %623 = vperm.xlu0 %1633, %v1977_v17   ;;  %s1820_s25 = smov [#allocation2]  }
  0xa1   : > { %s1739_s27 = sshll.u32 %s1820_s25, 4  ;;  %s1740_s27 = int_to_ptr.vmem [resolvable:$false] %s1739_s27 }
  0xa2   : > { %s1741_s29 = scalar_lea.vmem %s1740_s27, 256  ;;  %p1742_p1 = scmp.lt.s32.totalorder %s2785_s14, %s1740_s27 }
  0xa3   : > { %p1743_p2 = scmp.lt.s32.totalorder %s1741_s29, %s1735_s24 }
  0xa4   : > { %627 = vperm.xlu1 %1632, %v1980_v18   ;;  %631 = vperm.xlu0 %1633, %v2003_v26  }
  0xa5   : > { %p1744_p3 = por %p1743_p2, %p1742_p1 }
  0xa6   : > { %v2209_v16 = vpop.permute.xlu1 %553 }
  0xa7   : > { %p1745_p5 = pnand %p1744_p3, %p1738_p0 }
  0xa8   : > { %635 = vperm.xlu1 %1632, %v2026_v35   ;;  %1636 = vset.pattern.permute.xlu0 %v1818_v41 }
  0xa9   : > { %731 = vperm.xlu0 %1636, %v1944_v7  }
  0xaa   : > { %v2214_v20 = vpop.permute.xlu1 %558 }
  0xab   : > { %v592_v34 = vsub.f32 %v2214_v20, %v2229_v24 }
  0xac   : > { %1634 = vset.pattern.permute.xlu1 %v1819_v23 }
  0xad   : > { %671 = vperm.xlu1 %1634, %v1944_v7   ;;  %743 = vperm.xlu0 %1636, %v1977_v17   ;;  %v2234_v7 = vpop.permute.xlu0 %548  ;;  %v600_v40 = vand.u32 2147483647, %v592_v34  ;;  %v700_v34 = vsub.s32 2, %v1910_v2 }
  0xae   : > { %v2222_v27 = vpop.permute.xlu1 %568  ;;  %v590_v25 = vsub.f32 %v2234_v7, %v2229_v24 }
  0xb0   : > { %v598_v38 = vand.u32 2147483647, %v590_v25 }
  0xb1   : > { %675 = vperm.xlu1 %1634, %v1922_v4   ;;  %751 = vperm.xlu0 %1636, %v2003_v26  }
  0xb2   : > { %v2232_v36 = vpop.permute.xlu1 %578 }
  0xb5   : > { %683 = vperm.xlu1 %1634, %v1977_v17   ;;  %1637 = vset.pattern.permute.xlu0 %v1819_v23 }
  0xb6   : > { %667 = vperm.xlu0 %1637, %v1919_v3  }
  0xb7   : > { %v2243_v10 = vpop.permute.xlu1 %607 }
  0xb8   : > { %v642_v39 = vsub.f32 %v2243_v10, %v2240_v33 }
  0xb9   : > { %691 = vperm.xlu1 %1634, %v2003_v26   ;;  %v2266_v26 = vpop.permute.xlu0 %563 }
  0xba   : > { %679 = vperm.xlu0 %1637, %v1947_v8   ;;  %v650_v17 = vand.u32 2147483647, %v642_v39 }
  0xbb   : > { %v2251_v43 = vpop.permute.xlu1 %615 }
  0xbc   : > { %v2253_v42 = vadd.f32 %v650_v17, %v598_v38  ;;  %v644_v12 = vsub.f32 %v2251_v43, %v2240_v33  ;;  %v760_v38 = vsub.s32 3, %v1910_v2 }
  0xbd   : > { %1635 = vset.pattern.permute.xlu1 %v1818_v41  ;;  %v2268_v46 = vpop.permute.xlu0 %573 }
  0xbe   : > { %727 = vperm.xlu1 %1635, %v1919_v3   ;;  %687 = vperm.xlu0 %1637, %v1980_v18   ;;  %v652_v30 = vand.u32 2147483647, %v644_v12 }
  0xbf   : > { %v2274_v48 = vpop.permute.xlu1 %619 }
  0xc0   : > { %v2259_v44 = vadd.f32 %v652_v30, %v600_v40  ;;  %v2325_v40 = vrot.slane %v2224_v28, %v700_v34  ;;  %v2330_v30 = vrot.slane %v2224_v28, %v760_v38 }
  0xc1   : > { %v2270_v3 = vpop.permute.xlu0 %583 }
  0xc2   : > { %735 = vperm.xlu1 %1635, %v1922_v4   ;;  %695 = vperm.xlu0 %1637, %v2026_v35  }
  0xc5   : > { %v2272_v47 = vpop.permute.xlu0 %611 }
  0xc6   : > { %739 = vperm.xlu1 %1635, %v1947_v8  }
  0xca   : > { %747 = vperm.xlu1 %1635, %v1980_v18  }
  0xce   : > { %755 = vperm.xlu1 %1635, %v2026_v35  }
  0xd2   : > { %1638 = vset.pattern.permute.xlu1 %v1819_v23 }
 0x102   : > { %v899_v4 = vpop.permute.xlu0 %898 }
 0x103   : > { %v922_v49 = vmul.f32 %v899_v4, %v2175_v56  ;;  %v595_v56 = vsub.f32 %v2268_v46, %v2229_v24  ;;  %v794_v4 = vmax.f32 %v2234_v7, %v2229_v24 }
 0x105   : > { %940 = vperm.xlu0 %1637, %v922_v49  }
 0x106   : > { %v901_v8 = vpop.permute.xlu1 %900  ;;  %v903_v15 = vpop.permute.xlu0 %902 }
 0x107   : > { %v923_v18 = vmul.f32 %v901_v8, %v2182_v22  ;;  %v924_v31 = vmul.f32 %v903_v15, %v2179_v21  ;;  %v603_v22 = vand.u32 2147483647, %v595_v56  ;;  %v826_v8 = vmax.f32 %v2243_v10, %v2240_v33 }
 0x109   : > { %945 = vperm.xlu1 %1638, %v923_v18  }
 0x10a   : > { %v905_v35 = vpop.permute.xlu1 %904  ;;  %v907_v50 = vpop.permute.xlu0 %906 }
 0x10b   : > { %v925_v51 = vmul.f32 %v905_v35, %v2187_v58  ;;  %v926_v19 = vmul.f32 %v907_v50, %v2190_v60  ;;  %v597_v58 = vsub.f32 %v2270_v3, %v2229_v24 }
 0x10d   : > { %955 = vperm.xlu0 %1637, %v925_v51   ;;  %950 = vperm.xlu1 %1638, %v924_v31   ;;  %v605_v14 = vand.u32 2147483647, %v597_v58  ;;  %v796_v51 = vmax.f32 %v2214_v20, %v2229_v24 }
 0x10e   : > { %v909_v52 = vpop.permute.xlu1 %908  ;;  %v911_v53 = vpop.permute.xlu0 %910 }
 0x10f   : > { %v927_v63 = vmul.f32 %v909_v52, %v2195_v61  ;;  %v928_v0 = vmul.f32 %v911_v53, %v2198_v1  ;;  %v1054_v52 = vmin.f32 %v2243_v10, %v2240_v33 }
 0x111   : > { %965 = vperm.xlu0 %1637, %v927_v63   ;;  %960 = vperm.xlu1 %1638, %v926_v19   ;;  %v828_v63 = vmax.f32 %v2251_v43, %v2240_v33 }
 0x112   : > { %v913_v54 = vpop.permute.xlu1 %912 }
 0x113   : > { %v929_v32 = vmul.f32 %v913_v54, %v2203_v9 }
 0x115   : > { %975 = vperm.xlu0 %1637, %v929_v32   ;;  %970 = vperm.xlu1 %1638, %v928_v0  }
 0x11b   : > { %v2284_v55 = vpop.permute.xlu0 %623 }
 0x11f   : > { %v2288_v21 = vpop.permute.xlu1 %627  ;;  %v2290_v37 = vpop.permute.xlu0 %631 }
 0x120   : > { %v647_v57 = vsub.f32 %v2288_v21, %v2240_v33 }
 0x122   : > { %v655_v59 = vand.u32 2147483647, %v647_v57  ;;  %v1030_v57 = vmin.f32 %v2234_v7, %v2229_v24 }
 0x123   : > { %v2296_v13 = vpop.permute.xlu1 %635 }
 0x124   : > { %v2298_v60 = vadd.f32 %v655_v59, %v603_v22  ;;  %v649_v61 = vsub.f32 %v2296_v13, %v2240_v33  ;;  %v2302_v62 = vpop.permute.xlu0 %731 }
 0x126   : > { %2883 = vst [vmem:[#allocation9_spill] sm:$0xff] %v2298_v60  ;;  %v657_v1 = vand.u32 2147483647, %v649_v61  ;;  %v1056_v61 = vmin.f32 %v2251_v43, %v2240_v33 }
 0x128   : > { %v2304_v9 = vadd.f32 %v657_v1, %v605_v14  ;;  %v2306_v41 = vpop.permute.xlu1 %671  ;;  %v2308_v23 = vpop.permute.xlu0 %743 }
 0x12a   : > { %2884 = vst [vmem:[#allocation10_spill] sm:$0xff] %v2304_v9  ;;  %v2893_v9 = vmin.f32 %v2232_v36, %v2229_v24 }
 0x12c   : > { %v2310_v45 = vpop.permute.xlu1 %675  ;;  %v2312_v29 = vpop.permute.xlu0 %751 }
 0x12d   : > { %2885 = vst [vmem:[#allocation11_spill] sm:$0xff] %v2312_v29  ;;  %v788_v18 = vmin.f32 %v2310_v45, %v2325_v40  ;;  %v1024_v14 = vmax.f32 %v2310_v45, %v2325_v40 }
 0x12f   : > { %v804_v32 = vsub.f32 %v788_v18, %v796_v51  ;;  %v593_v51 = vsub.f32 %v2266_v26, %v2229_v24 }
 0x130   : > { %v2314_v25 = vpop.permute.xlu1 %683 }
 0x131   : > { %v2318_v39 = vpop.permute.xlu0 %667 }
 0x132   : > { %v786_v12 = vmin.f32 %v2318_v39, %v2325_v40  ;;  %v1022_v53 = vmax.f32 %v2318_v39, %v2325_v40 }
 0x134   : > { %v2320_v17 = vpop.permute.xlu1 %691  ;;  %v802_v35 = vsub.f32 %v786_v12, %v794_v4  ;;  %v1038_v1 = vsub.f32 %v1022_v53, %v1030_v57  ;;  %v812_v12 = vmax.f32 %v804_v32, 0.0  ;;  %v1032_v4 = vmin.f32 %v2214_v20, %v2229_v24 }
 0x135   : > { %v643_v20 = vsub.f32 %v2272_v47, %v2240_v33  ;;  %v594_v53 = vsub.f32 %v2222_v27, %v2229_v24  ;;  %v646_v32 = vsub.f32 %v2284_v55, %v2240_v33  ;;  %v2394_v57 = vand.u32 2147483647, %v593_v51 }
 0x136   : > { %v810_v56 = vmax.f32 %v802_v35, 0.0  ;;  %v1040_v18 = vsub.f32 %v1024_v14, %v1032_v4  ;;  %v827_v51 = vmax.f32 %v2272_v47, %v2240_v33 }
 0x139   : > { %v2334_v49 = vpop.permute.xlu1 %727 }
 0x13a   : > { %v818_v15 = vmin.f32 %v2334_v49, %v2330_v30  ;;  %v1046_v31 = vmax.f32 %v2334_v49, %v2330_v30 }
 0x13c   : > { %v834_v50 = vsub.f32 %v818_v15, %v826_v8  ;;  %v1062_v22 = vsub.f32 %v1046_v31, %v1054_v52  ;;  %v591_v31 = vsub.f32 %v2209_v16, %v2229_v24 }
 0x13d   : > { %v2348_v19 = vpop.permute.xlu1 %735 }
 0x13e   : > { %v842_v54 = vmax.f32 %v834_v50, 0.0  ;;  %v820_v0 = vmin.f32 %v2348_v19, %v2330_v30  ;;  %v1048_v10 = vmax.f32 %v2348_v19, %v2330_v30  ;;  %v2368_v8 = vmul.f32 %v1062_v22, %v1038_v1 }
 0x13f   : > { %v931_v50 = vrot.slane %v2224_v28, 6  ;;  %v602_v1 = vand.u32 2147483647, %v594_v53  ;;  %v1047_v22 = vmax.f32 %v2302_v62, %v2330_v30 }
 0x140   : > { %v836_v58 = vsub.f32 %v820_v0, %v828_v63  ;;  %v2360_v59 = vmul.f32 %v842_v54, %v810_v56  ;;  %v1064_v7 = vsub.f32 %v1048_v10, %v1056_v61  ;;  %v795_v63 = vmax.f32 %v2209_v16, %v2229_v24 }
 0x141   : > { %v933_v43 = vsub.f32 %v2224_v28, %v931_v50  ;;  %v599_v54 = vand.u32 2147483647, %v591_v31  ;;  %v1031_v28 = vmin.f32 %v2209_v16, %v2229_v24  ;;  %v645_v61 = vsub.f32 %v2274_v48, %v2240_v33  ;;  %v2472_v0 = vpop.permute.xlu1 %739 }
 0x142   : > { %v844_v38 = vmax.f32 %v836_v58, 0.0  ;;  %v2372_v35 = vmul.f32 %v1064_v7, %v1040_v18  ;;  %v651_v58 = vand.u32 2147483647, %v643_v20  ;;  %v1055_v20 = vmin.f32 %v2272_v47, %v2240_v33  ;;  %v2442_v18 = vpop.permute.xlu0 %679  ;;  %2888 = vst [vmem:[#allocation14_spill] sm:$0xff] %v2472_v0 }
 0x143   : > { %v935_v52 = vrot.slane %v933_v43, 1  ;;  %v2424_v53 = vand.u32 2147483647, %v645_v61  ;;  %v1058_v47 = vmin.f32 %v2284_v55, %v2240_v33  ;;  %v787_v61 = vmin.f32 %v2306_v41, %v2325_v40 }
 0x144   : > { %v2370_v15 = vmul.f32 %v844_v38, %v812_v12  ;;  %v2416_v31 = vadd.f32 %v651_v58, %v599_v54  ;;  %v648_v58 = vsub.f32 %v2290_v37, %v2240_v33  ;;  %v763_v16 = vsub.f32 %v2302_v62, %v2330_v30 }
 0x145   : > { %v937_v14 = vmul.f32 %v935_v52, %v933_v43  ;;  %v654_v43 = vand.u32 2147483647, %v646_v32  ;;  %v819_v52 = vmin.f32 %v2302_v62, %v2330_v30  ;;  %2886 = vst [vmem:[#allocation12_spill] sm:$0xff] %v2424_v53  ;;  %v830_v32 = vmax.f32 %v2284_v55, %v2240_v33 }
 0x146   : > { %v703_v50 = vsub.f32 %v2306_v41, %v2325_v40  ;;  %v803_v62 = vsub.f32 %v787_v61, %v795_v63  ;;  %v1050_v38 = vmax.f32 %v2308_v23, %v2330_v30  ;;  %v824_v7 = vmin.f32 %v2312_v29, %v2330_v30  ;;  %v2485_v56 = vpop.permute.xlu0 %687 }
 0x147   : > { %v2432_v54 = vrot.slane %v937_v14, %v700_v34  ;;  %v2444_v4 = vadd.f32 %v654_v43, %v602_v1  ;;  %v835_v55 = vsub.f32 %v819_v52, %v827_v51  ;;  %v822_v1 = vmin.f32 %v2308_v23, %v2330_v30 }
 0x148   : > { %v832_v43 = vmax.f32 %v2290_v37, %v2240_v33  ;;  %v1060_v34 = vmin.f32 %v2290_v37, %v2240_v33  ;;  %v1023_v14 = vmax.f32 %v2306_v41, %v2325_v40  ;;  %v766_v51 = vsub.f32 %v2308_v23, %v2330_v30 }
 0x149   : > { %v2466_v52 = vand.u32 2147483647, %v648_v58  ;;  %v2478_v10 = vand.u32 2147483647, %v763_v16  ;;  %v1078_v58 = vadd.f32 1e-07, %v2368_v8  ;;  %v1063_v63 = vsub.f32 %v1047_v22, %v1055_v20 }
 0x14a   : > { %v843_v12 = vmax.f32 %v835_v55, 0.0  ;;  %v2481_v61 = vand.u32 2147483647, %v703_v50  ;;  %v2483_v23 = vsub.f32 %v822_v1, %v830_v32  ;;  %v1039_v5 = vsub.f32 %v1023_v14, %v1031_v28 }
 0x14b   : > { %2887 = vst [vmem:[#allocation13_spill] sm:$0xff] %v2466_v52  ;;  %v2487_v6 = vand.u32 2147483647, %v766_v51  ;;  %v1052_v37 = vmax.f32 %v2312_v29, %v2330_v30  ;;  %v790_v16 = vmin.f32 %v2314_v25, %v2325_v40  ;;  %v811_v41 = vmax.f32 %v803_v62, 0.0 }
 0x14c   : > { %v2493_v11 = vsub.f32 %v1050_v38, %v1058_v47  ;;  %v2495_v55 = vsub.f32 %v824_v7, %v832_v43  ;;  %v702_v22 = vsub.f32 %v2318_v39, %v2325_v40  ;;  %v706_v28 = vsub.f32 %v2314_v25, %v2325_v40  ;;  %v2512_v47 = vpop.permute.xlu1 %747  ;;  %v2526_v38 = vpop.permute.xlu0 %695 }
 0x14d   : > { %v792_v20 = vmin.f32 %v2320_v17, %v2325_v40  ;;  %1703 = vrcp.f32 %v1078_v58  ;;  %v1026_v7 = vmax.f32 %v2314_v25, %v2325_v40  ;;  %v789_v39 = vmin.f32 %v2442_v18, %v2325_v40 }
 0x14e   : > { %v2514_v14 = vsub.f32 %v1052_v37, %v1060_v34  ;;  %v2889_v1 = vmax.f32 %v2222_v27, %v2229_v24  ;;  %v1028_v51 = vmax.f32 %v2320_v17, %v2325_v40  ;;  %v821_v62 = vmin.f32 %v2472_v0, %v2330_v30 }
 0x14f   : > { %v710_v58 = vand.u32 2147483647, %v702_v22  ;;  %v1049_v34 = vmax.f32 %v2472_v0, %v2330_v30  ;;  %v2530_v37 = vmul.f32 %v843_v12, %v811_v41  ;;  %v2532_v50 = vand.u32 2147483647, %v706_v28 }
 0x150   : > { %v2519_v43 = vsub.f32 %v790_v16, %v2889_v1  ;;  %v2890_v16 = vmax.f32 %v2232_v36, %v2229_v24  ;;  %v1025_v32 = vmax.f32 %v2442_v18, %v2325_v40  ;;  %v1080_v25 = vadd.f32 1e-07, %v2372_v35 }
 0x151   : > { %v2891_v22 = vmin.f32 %v2222_v27, %v2229_v24  ;;  %v2892_v12 = vmax.f32 %v2266_v26, %v2229_v24  ;;  %v762_v28 = vsub.f32 %v2334_v49, %v2330_v30  ;;  %v1044_v60 = vsub.f32 %v1028_v51, %v2893_v9  ;;  %v2571_v51 = vpop.permute.xlu1 %755 }
 0x152   : > { %v2537_v1 = vsub.f32 %v792_v20, %v2890_v16  ;;  %v791_v20 = vmin.f32 %v2485_v56, %v2325_v40  ;;  %v814_v16 = vmax.f32 %v2519_v43, 0.0  ;;  %v1027_v27 = vmax.f32 %v2485_v56, %v2325_v40  ;;  %2896 = vst [vmem:[#allocation15_spill] sm:$0xff] %v2571_v51 }
 0x153   : > { %v1042_v2 = vsub.f32 %v1026_v7, %v2891_v22  ;;  %v805_v41 = vsub.f32 %v789_v39, %v2892_v12  ;;  %v2894_v7 = vmax.f32 %v2274_v48, %v2240_v33  ;;  %v2562_v39 = vadd.f32 %v710_v58, %v2253_v42 }
 0x154   : > { %v2895_v49 = vmin.f32 %v2274_v48, %v2240_v33  ;;  %v823_v43 = vmin.f32 %v2512_v47, %v2330_v30  ;;  %v1051_v9 = vmax.f32 %v2512_v47, %v2330_v30  ;;  %1705 = vrcp.f32 %v1080_v25 }
 0x155   : > { %v837_v22 = vsub.f32 %v821_v62, %v2894_v7  ;;  %v2897_v62 = vmin.f32 %v2266_v26, %v2229_v24  ;;  %v813_v48 = vmax.f32 %v805_v41, 0.0  ;;  %v2898_v7 = vmax.f32 %v2268_v46, %v2229_v24 }
 0x156   : > { %v1065_v12 = vsub.f32 %v1049_v34, %v2895_v49  ;;  %v2578_v34 = vand.u32 2147483647, %v762_v28  ;;  %v2583_v52 = vmul.f32 %v1063_v63, %v1039_v5  ;;  %v2899_v53 = vmin.f32 %v2268_v46, %v2229_v24 }
 0x157   : > { %v1041_v42 = vsub.f32 %v1025_v32, %v2897_v62  ;;  %v807_v49 = vsub.f32 %v791_v20, %v2898_v7  ;;  %v845_v32 = vmax.f32 %v837_v22, 0.0  ;;  %v2900_v25 = vmax.f32 %v2288_v21, %v2240_v33 }
 0x158   : > { %v1043_v29 = vsub.f32 %v1027_v27, %v2899_v53  ;;  %v2901_v28 = vmin.f32 %v2288_v21, %v2240_v33  ;;  %v825_v5 = vmin.f32 %v2571_v51, %v2330_v30  ;;  %v1053_v53 = vmax.f32 %v2571_v51, %v2330_v30 }
 0x159   : > { %v839_v41 = vsub.f32 %v823_v43, %v2900_v25  ;;  %v2599_v46 = vmul.f32 %v1065_v12, %v1041_v42  ;;  %v815_v43 = vmax.f32 %v807_v49, 0.0  ;;  %v793_v21 = vmin.f32 %v2526_v38, %v2325_v40 }
 0x15a   : > { %v1067_v20 = vsub.f32 %v1051_v9, %v2901_v28  ;;  %v1029_v9 = vmax.f32 %v2526_v38, %v2325_v40  ;;  %v1079_v7 = vadd.f32 1e-07, %v2583_v52  ;;  %v2615_v25 = vmul.f32 %v845_v32, %v813_v48 }
 0x15b   : > { %v2902_v49 = vmax.f32 %v2296_v13, %v2240_v33  ;;  %v2622_v51 = vmul.f32 %v2493_v11, %v1042_v2 }
 0x15c   : > { %v2629_v32 = vmul.f32 %v1067_v20, %v1043_v29 }
 0x180   : > { %v941_v0 = vpop.permute.xlu0 %940 }
 0x181   : > { %v982_v58 = vadd.f32 %v2432_v54, %v941_v0 }
 0x183   : > { %v990_v0 = vsub.f32 %v982_v58, %v2360_v59  ;;  %v1704_v58 = vpop.eup %1703 }
 0x184   : > { %v946_v63 = vpop.permute.xlu1 %945 }
 0x185   : > { %v998_v27 = vadd.f32 1e-07, %v990_v0  ;;  %v1094_v22 = vsub.f32 %v2368_v8, %v990_v0  ;;  %v983_v62 = vadd.f32 %v2432_v54, %v946_v63  ;;  %v847_v8 = vmax.f32 %v839_v41, 0.0 }
 0x186   : > { %v841_v0 = vsub.f32 %v825_v5, %v2902_v49  ;;  %v1081_v63 = vadd.f32 1e-07, %v2599_v46  ;;  %v2904_v41 = vmax.f32 %v2270_v3, %v2229_v24 }
 0x187   : > { %1707 = vrcp.f32 %v998_v27  ;;  %v2610_v12 = vmul.f32 %v1704_v58, %v1094_v22  ;;  %v2613_v42 = vsub.f32 %v983_v62, %v2530_v37  ;;  %v2903_v27 = vmin.f32 %v2296_v13, %v2240_v33 }
 0x188   : > { %v951_v28 = vpop.permute.xlu1 %950  ;;  %v956_v26 = vpop.permute.xlu0 %955  ;;  %v809_v5 = vsub.f32 %v793_v21, %v2904_v41  ;;  %v2905_v58 = vmin.f32 %v2270_v3, %v2229_v24  ;;  %1709 = vrcp.f32 %v1079_v7  ;;  %v2906_v13 = vmax.f32 %v2483_v23, 0.0 }
 0x189   : > { %v1069_v22 = vsub.f32 %v1053_v53, %v2903_v27  ;;  %v984_v62 = vadd.f32 %v2432_v54, %v951_v28  ;;  %v985_v48 = vadd.f32 %v2432_v54, %v956_v26  ;;  %v999_v2 = vadd.f32 1e-07, %v2613_v42  ;;  %v1706_v23 = vpop.eup %1705 }
 0x18a   : > { %v1045_v49 = vsub.f32 %v1029_v9, %v2905_v58  ;;  %v2644_v29 = vmul.f32 %v2906_v13, %v814_v16  ;;  %v2647_v26 = vmul.f32 %v2514_v14, %v1044_v60  ;;  %v849_v20 = vmax.f32 %v841_v0, 0.0  ;;  %v1550_v13 = vpop.f32.mrf.mxu0 }
 0x18b   : > { %v992_v11 = vsub.f32 %v984_v62, %v2370_v15  ;;  %v2640_v33 = vsub.f32 %v985_v48, %v2615_v25  ;;  %1711 = vrcp.f32 %v1081_v63  ;;  %v1082_v3 = vadd.f32 1e-07, %v2622_v51 }
 0x18c   : > { %v961_v53 = vpop.permute.xlu1 %960  ;;  %v2650_v21 = vmul.f32 %v847_v8, %v815_v43  ;;  %v966_v9 = vpop.permute.xlu0 %965  ;;  %v1083_v27 = vadd.f32 1e-07, %v2629_v32  ;;  %v2654_v62 = vmul.f32 %v1069_v22, %v1045_v49  ;;  %1713 = vrcp.f32 %v999_v2 }
 0x18d   : > { %v1000_v7 = vadd.f32 1e-07, %v992_v11  ;;  %v1096_v28 = vsub.f32 %v2372_v35, %v992_v11  ;;  %v1001_v60 = vadd.f32 1e-07, %v2640_v33  ;;  %v986_v14 = vadd.f32 %v2432_v54, %v961_v53 }
 0x18e   : > { %v987_v16 = vadd.f32 %v2432_v54, %v966_v9  ;;  %v817_v0 = vmax.f32 %v809_v5, 0.0  ;;  %v1084_v8 = vadd.f32 1e-07, %v2647_v26  ;;  %v2907_v48 = vmax.f32 %v2537_v1, 0.0 }
 0x18f   : > { %1715 = vrcp.f32 %v1000_v7  ;;  %v2659_v43 = vmul.f32 %v1706_v23, %v1096_v28  ;;  %v2663_v35 = vsub.f32 %v986_v14, %v2644_v29  ;;  %v2908_v41 = vmax.f32 %v2495_v55, 0.0 }
 0x190   : > { %1717 = vrcp.f32 %v1082_v3  ;;  %v2666_v63 = vsub.f32 %v987_v16, %v2650_v21  ;;  %v971_v22 = vpop.permute.xlu1 %970  ;;  %v976_v5 = vpop.permute.xlu0 %975  ;;  %v2675_v2 = vmul.f32 %v849_v20, %v817_v0  ;;  %v1085_v1 = vadd.f32 1e-07, %v2654_v62 }
 0x191   : > { %v2672_v58 = vmul.f32 %v2908_v41, %v2907_v48  ;;  %1719 = vrcp.f32 %v1083_v27  ;;  %v988_v49 = vadd.f32 %v2432_v54, %v971_v22  ;;  %v989_v11 = vadd.f32 %v2432_v54, %v976_v5 }
 0x192   : > { %1721 = vrcp.f32 %v1001_v60  ;;  %v1002_v53 = vadd.f32 1e-07, %v2663_v35  ;;  %v1003_v3 = vadd.f32 1e-07, %v2666_v63  ;;  %v778_v55 = vadd.f32 %v2578_v34, %v2562_v39  ;;  %v1209_v60 = vpop.f32.mrf.mxu0 }
 0x193   : > { %v2684_v9 = vsub.f32 %v988_v49, %v2672_v58  ;;  %1723 = vrcp.f32 %v1084_v8  ;;  %v2687_v20 = vsub.f32 %v989_v11, %v2675_v2  ;;  %v2909_v54 = vsub.f32 %v2310_v45, %v2325_v40 }
 0x194   : > { %v1708_v7 = vpop.eup %1707  ;;  %v719_v27 = vadd.f32 %v2481_v61, %v2416_v31  ;;  %v708_v23 = vsub.f32 %v2320_v17, %v2325_v40  ;;  %1725 = vrcp.f32 %v1002_v53  ;;  %v705_v39 = vsub.f32 %v2442_v18, %v2325_v40  ;;  %v2705_v61 = vpop.f32.mrf.mxu1  ;;  %v2912_v53 = vld [vmem:[#allocation12_spill] sm:$0xff] }
 0x195   : > { %v712_v28 = vand.u32 2147483647, %v2909_v54  ;;  %v1014_v34 = vmul.f32 %v1708_v7, %v2360_v59  ;;  %1727 = vrcp.f32 %v1003_v3  ;;  %v1004_v14 = vadd.f32 1e-07, %v2684_v9  ;;  %v1710_v17 = vpop.eup %1709  ;;  %v2717_v48 = vpop.f32.mrf.mxu0 }
 0x196   : > { %v722_v45 = vadd.f32 %v2532_v50, %v2444_v4  ;;  %v707_v16 = vsub.f32 %v2485_v56, %v2325_v40  ;;  %1729 = vrcp.f32 %v1085_v1  ;;  %v1005_v31 = vadd.f32 1e-07, %v2687_v20  ;;  %v2914_v1 = vld [vmem:[#allocation11_spill] sm:$0xff] }
 0x197   : > { %v2910_v18 = vsub.f32 %v2348_v19, %v2330_v30  ;;  %v1210_v59 = vadd.f32 %v1209_v60, %v778_v55  ;;  %v1110_v8 = vsub.f32 %v1014_v34, %v2610_v12  ;;  %1731 = vrcp.f32 %v1004_v14 }
 0x198   : > { %v2911_v4 = vsub.f32 %v2232_v36, %v2229_v24  ;;  %v779_v56 = vadd.f32 %v2478_v10, %v719_v27  ;;  %v709_v22 = vsub.f32 %v2526_v38, %v2325_v40  ;;  %1733 = vrcp.f32 %v1005_v31  ;;  %v1712_v41 = vpop.eup %1711  ;;  %v2913_v38 = vld [vmem:[#allocation13_spill] sm:$0xff] }
 0x199   : > { %v772_v0 = vand.u32 2147483647, %v2910_v18  ;;  %v716_v5 = vand.u32 2147483647, %v708_v23  ;;  %v720_v19 = vadd.f32 %v712_v28, %v2259_v44  ;;  %v767_v12 = vsub.f32 %v2512_v47, %v2330_v30  ;;  %v1714_v10 = vpop.eup %1713  ;;  %v1229_v44 = vpop.f32.mrf.mxu1  ;;  %v2916_v23 = vld [vmem:[#allocation14_spill] sm:$0xff] }
 0x19a   : > { %v604_v50 = vand.u32 2147483647, %v2911_v4  ;;  %v2722_v49 = vsub.f32 %v1210_v59, %v1110_v8  ;;  %v713_v11 = vand.u32 2147483647, %v705_v39  ;;  %v782_v24 = vadd.f32 %v2487_v6, %v722_v45  ;;  %v1219_v6 = vpop.f32.mrf.mxu0  ;;  %v2917_v39 = vld [vmem:[#allocation15_spill] sm:$0xff]  ;;  %v2918_v59 = vld [vmem:[#allocation9_spill] sm:$0xff] }
 0x19b   : > { %v715_v36 = vand.u32 2147483647, %v707_v16  ;;  %v661_v40 = vadd.f32 %v2912_v53, %v2394_v57  ;;  %v2915_v55 = vsub.f32 %v2914_v1, %v2330_v30  ;;  %v780_v54 = vadd.f32 %v772_v0, %v720_v19 }
 0x19c   : > { %v664_v3 = vadd.f32 %v2913_v38, %v604_v50  ;;  %v1716_v28 = vpop.eup %1715  ;;  %v1215_v47 = vadd.f32 %v1550_v13, %v779_v56  ;;  %v717_v27 = vand.u32 2147483647, %v709_v22  ;;  %v765_v60 = vsub.f32 %v2916_v23, %v2330_v30 }
 0x19d   : > { %v776_v7 = vand.u32 2147483647, %v2915_v55  ;;  %v769_v34 = vsub.f32 %v2917_v39, %v2330_v30  ;;  %v1718_v14 = vpop.eup %1717  ;;  %v775_v45 = vand.u32 2147483647, %v767_v12  ;;  %v1095_v16 = vsub.f32 %v2583_v52, %v2613_v42  ;;  %v1559_v42 = vpop.f32.mrf.mxu1 }
 0x19e   : > { %v724_v57 = vadd.f32 %v716_v5, %v664_v3  ;;  %v1016_v31 = vmul.f32 %v1716_v28, %v2370_v15  ;;  %v1720_v18 = vpop.eup %1719  ;;  %v1230_v0 = vadd.f32 %v1229_v44, %v782_v24  ;;  %v723_v13 = vadd.f32 %v715_v36, %v2918_v59  ;;  %v2919_v15 = vld [vmem:[#allocation10_spill] sm:$0xff] }
 0x19f   : > { %v721_v8 = vadd.f32 %v713_v11, %v661_v40  ;;  %v1098_v4 = vsub.f32 %v2622_v51, %v2663_v35  ;;  %v1722_v50 = vpop.eup %1721  ;;  %v1220_v56 = vadd.f32 %v1219_v6, %v780_v54  ;;  %v1015_v30 = vmul.f32 %v1714_v10, %v2530_v37  ;;  %v1239_v55 = vpop.f32.mrf.mxu1 }
 0x1a0   : > { %v1112_v22 = vsub.f32 %v1016_v31, %v2659_v43  ;;  %v1099_v5 = vsub.f32 %v2629_v32, %v2666_v63  ;;  %v1724_v52 = vpop.eup %1723  ;;  %v725_v19 = vadd.f32 %v717_v27, %v2919_v15  ;;  %v773_v12 = vand.u32 2147483647, %v765_v60 }
 0x1a1   : > { %v777_v24 = vand.u32 2147483647, %v769_v34  ;;  %v1097_v11 = vsub.f32 %v2599_v46, %v2640_v33  ;;  %v1726_v36 = vpop.eup %1725  ;;  %v783_v51 = vadd.f32 %v775_v45, %v723_v13  ;;  %v1103_v35 = vmul.f32 %v1710_v17, %v1095_v16 }
 0x1a2   : > { %v2748_v53 = vsub.f32 %v1220_v56, %v1112_v22  ;;  %v1100_v37 = vsub.f32 %v2647_v26, %v2684_v9  ;;  %v1728_v43 = vpop.eup %1727  ;;  %v1017_v32 = vmul.f32 %v1722_v50, %v2615_v25  ;;  %v1018_v63 = vmul.f32 %v1726_v36, %v2644_v29 }
 0x1a3   : > { %v1106_v10 = vmul.f32 %v1718_v14, %v1098_v4  ;;  %v1101_v40 = vsub.f32 %v2654_v62, %v2687_v20  ;;  %v1730_v38 = vpop.eup %1729  ;;  %v784_v3 = vadd.f32 %v776_v7, %v724_v57  ;;  %v1111_v46 = vsub.f32 %v1015_v30, %v1103_v35  ;;  %v2920_v30 = vld [vmem:[#allocation5_spill] sm:$0xff] }
 0x1a4   : > { %v1019_v33 = vmul.f32 %v1728_v43, %v2650_v21  ;;  %v1107_v17 = vmul.f32 %v1720_v18, %v1099_v5  ;;  %v1732_v1 = vpop.eup %1731  ;;  %v781_v44 = vadd.f32 %v773_v12, %v721_v8  ;;  %v785_v54 = vadd.f32 %v777_v24, %v725_v19 }
 0x1a5   : > { %v1105_v26 = vmul.f32 %v1712_v41, %v1097_v11  ;;  %v1114_v9 = vsub.f32 %v1018_v63, %v1106_v10  ;;  %v1734_v28 = vpop.eup %1733  ;;  %v1235_v25 = vadd.f32 %v2705_v61, %v783_v51  ;;  %v1020_v27 = vmul.f32 %v1732_v1, %v2672_v58 }
 0x1a6   : > { %v1115_v29 = vsub.f32 %v1019_v33, %v1107_v17  ;;  %v1108_v23 = vmul.f32 %v1724_v52, %v1100_v37  ;;  %v1021_v7 = vmul.f32 %v1734_v28, %v2675_v2  ;;  %v1109_v21 = vmul.f32 %v1730_v38, %v1101_v40 }
 0x1a7   : > { %v1113_v62 = vsub.f32 %v1017_v32, %v1105_v26  ;;  %v2759_v20 = vsub.f32 %v1230_v0, %v1114_v9  ;;  %v1240_v60 = vadd.f32 %v1239_v55, %v784_v3  ;;  %v2762_v6 = vsub.f32 %v1215_v47, %v1111_v46 }
 0x1a8   : > { %v2764_v39 = vsub.f32 %v1235_v25, %v1115_v29  ;;  %v1116_v41 = vsub.f32 %v1020_v27, %v1108_v23  ;;  %v1225_v34 = vadd.f32 %v2717_v48, %v781_v44  ;;  %v1245_v61 = vadd.f32 %v1559_v42, %v785_v54 }
 0x1a9   : > { %v1270_v58 = vmin.f32 %v2722_v49, %v2759_v20  ;;  %v1117_v14 = vsub.f32 %v1021_v7, %v1109_v21  ;;  %v1257_v22 = vadd.s32 32, %v2920_v30  ;;  %v1258_v5 = vadd.s32 40, %v2920_v30 }
 0x1aa   : > { %v1271_v57 = vmin.f32 %v2762_v6, %v2764_v39  ;;  %v2771_v2 = vsub.f32 %v1240_v60, %v1116_v41  ;;  %v1251_v45 = vsub.f32 %v1225_v34, %v1113_v62  ;;  %v1259_v52 = vadd.s32 48, %v2920_v30 }
 0x1ab   : > { %v2773_v47 = vsub.f32 %v1245_v61, %v1117_v14  ;;  %v1260_v42 = vadd.s32 56, %v2920_v30 }
 0x1ac   : > { %v1274_v16 = vmin.f32 %v1270_v58, %v1271_v57  ;;  %v1272_v31 = vmin.f32 %v2748_v53, %v2771_v2 }
 0x1ad   : > { %v1273_v48 = vmin.f32 %v1251_v45, %v2773_v47 }
 0x1af   : > { %v1275_v18 = vmin.f32 %v1272_v31, %v1273_v48 }
 0x1b1   : > { %v1276_v0 = vmin.f32 %v1274_v16, %v1275_v18 }
 0x1b3   : > { %v1277_v59 = vrot.slane %v1276_v0, 4 }
 0x1b5   : > { %v1278_v13 = vmin.f32 %v1276_v0, %v1277_v59 }
 0x1b7   : > { %v1279_v8 = vrot.slane %v1278_v13, 2 }
 0x1b9   : > { %v1280_v4 = vmin.f32 %v1278_v13, %v1279_v8 }
 0x1bb   : > { %v1281_v50 = vrot.slane %v1280_v4, 1 }
 0x1bd   : > { %v1282_v56 = vmin.f32 %v1280_v4, %v1281_v50 }
 0x1bf   : > { %vm1283_vm5 = vcmp.eq.f32.partialorder %v2722_v49, %v1282_v56  ;;  %vm1284_vm6 = vcmp.eq.f32.partialorder %v2762_v6, %v1282_v56  ;;  %vm1285_vm7 = vcmp.eq.f32.partialorder %v2748_v53, %v1282_v56  ;;  %vm1286_vm8 = vcmp.eq.f32.partialorder %v1251_v45, %v1282_v56  ;;  %1322 = vst [vmem:[%s295_s13] sm:$0xff] %v1282_v56 }
 0x1c0   : > { %vm1287_vm9 = vcmp.eq.f32.partialorder %v2759_v20, %v1282_v56  ;;  %vm1288_vm10 = vcmp.eq.f32.partialorder %v2764_v39, %v1282_v56  ;;  %vm1289_vm11 = vcmp.eq.f32.partialorder %v2771_v2, %v1282_v56  ;;  %vm1290_vm12 = vcmp.eq.f32.partialorder %v2773_v47, %v1282_v56 }
 0x1c1   : > { %1748 = shalt.err (!%p1745_p5)
}
 0x1c2   : > { %s1749_s8 = scalar_lea.hbm %s2783_s17, 128  ;;  %s1753_s11 = scalar_lea.hbm %s2867_s4, 256 }
 0x1c3   : > { %p1750_p6 = scmp.ne.s32.totalorder %s2783_s17, %s1749_s8  ;;  %p1754_p10 = scmp.lt.s32.totalorder %s2783_s17, %s2867_s4 }
 0x1c4   : > { %p1755_p11 = scmp.lt.s32.totalorder %s1753_s11, %s1749_s8 }
 0x1c5   : > { %p1751_p7 = pnand %p1750_p6, %p1891_p4 }
 0x1c6   : > { %p1756_p12 = por %p1755_p11, %p1754_p10 }
 0x1c7   : > { %p1752_p9 = pneg %p1751_p7 }
 0x1c9   : > { %p1757_p13 = pnand %p1756_p12, %p1752_p9 }
 0x1cb   : > { %1760 = shalt.err (!%p1757_p13)
}
 0x1cc   : > { %1568 = dma.vmem_to_hbm [thread:$0]  (%p1891_p4), %s2785_s14, 128, %s2783_s17, %s1325_s21   ;;  %v1291_v15 = vsel %vm1283_vm5, %v2920_v30, 2147483647  ;;  %v2921_v19 = vld [vmem:[#allocation8_spill] sm:$0xff]  ;;  %v2922_v24 = vld [vmem:[#allocation7_spill] sm:$0xff]  ;;  %v2923_v36 = vld [vmem:[#allocation6_spill] sm:$0xff] }
 0x1cd   : > { %v1292_v12 = vsel %vm1284_vm6, %v2921_v19, 2147483647  ;;  %v1293_v11 = vsel %vm1285_vm7, %v2922_v24, 2147483647  ;;  %v1294_v51 = vsel %vm1286_vm8, %v2923_v36, 2147483647 }
 0x1ce   : > { %v1295_v35 = vsel %vm1287_vm9, %v1257_v22, 2147483647  ;;  %v1296_v37 = vsel %vm1288_vm10, %v1258_v5, 2147483647  ;;  %v1297_v49 = vsel %vm1289_vm11, %v1259_v52, 2147483647 }
 0x1cf   : > { %v1298_v43 = vsel %vm1290_vm12, %v1260_v42, 2147483647  ;;  %vm1299_vm13 = vcmp.lt.s32.totalorder %v1291_v15, %v1295_v35  ;;  %vm1301_vm14 = vcmp.lt.s32.totalorder %v1292_v12, %v1296_v37  ;;  %vm1303_vm15 = vcmp.lt.s32.totalorder %v1293_v11, %v1297_v49  ;;  %s1504_s28 = sshll.u32 %s1908_s7, 3 }
 0x1d0   : > { %v1300_v32 = vsel %vm1299_vm13, %v1291_v15, %v1295_v35  ;;  %v1302_v53 = vsel %vm1301_vm14, %v1292_v12, %v1296_v37  ;;  %vm1305_vm0 = vcmp.lt.s32.totalorder %v1294_v51, %v1298_v43  ;;  %v1304_v63 = vsel %vm1303_vm15, %v1293_v11, %v1297_v49  ;;  %s338_s16 = scalar_lea.vmem %s2868_s5, %s1504_s28 }
 0x1d1   : > { %v1306_v10 = vsel %vm1305_vm0, %v1294_v51, %v1298_v43  ;;  %vm1307_vm1 = vcmp.lt.s32.totalorder %v1300_v32, %v1302_v53 }
 0x1d2   : > { %v1308_v40 = vsel %vm1307_vm1, %v1300_v32, %v1302_v53  ;;  %vm1309_vm2 = vcmp.lt.s32.totalorder %v1304_v63, %v1306_v10 }
 0x1d3   : > { %v1310_v38 = vsel %vm1309_vm2, %v1304_v63, %v1306_v10 }
 0x1d4   : > { %vm1311_vm3 = vcmp.lt.s32.totalorder %v1308_v40, %v1310_v38 }
 0x1d5   : > { %v1312_v3 = vsel %vm1311_vm3, %v1308_v40, %v1310_v38 }
 0x1d6   : > { %v1313_v46 = vrot.slane %v1312_v3, 4 }
 0x1d8   : > { %vm1314_vm4 = vcmp.lt.s32.totalorder %v1312_v3, %v1313_v46 }
 0x1d9   : > { %v1315_v33 = vsel %vm1314_vm4, %v1312_v3, %v1313_v46 }
 0x1da   : > { %v1316_v17 = vrot.slane %v1315_v33, 2 }
 0x1dc   : > { %vm1317_vm5 = vcmp.lt.s32.totalorder %v1315_v33, %v1316_v17 }
 0x1dd   : > { %v1318_v1 = vsel %vm1317_vm5, %v1315_v33, %v1316_v17 }
 0x1de   : > { %v1319_v55 = vrot.slane %v1318_v1, 1 }
 0x1e0   : > { %vm1320_vm6 = vcmp.lt.s32.totalorder %v1318_v1, %v1319_v55 }
 0x1e1   : > { %v1321_v44 = vsel %vm1320_vm6, %v1318_v1, %v1319_v55 }
 0x1e2   : > { %1323 = vst [vmem:[%s338_s16] sm:$0xff] %v1321_v44 }
 0x1e3 PF: > { %p1574_p4 = scmp.ge.s32.totalorder %s1811_s23, 2  ;;  %s1361_s17 = sand.u32 1, %s1791_s18  }
 0x1e4   : > { %s1362_s7 = scalar_lea.sflag [#allocation3], %s1361_s17 }
 0x1e5   : > { %p1571_p0 = pnand %p1574_p4, %p1898_p8 }
 0x1e7   : > { %p1572_p1 = pneg %p1571_p0 }
 0x1e9   : > { %1786 = dma.done.wait (%p1572_p1), %s1362_s7, 128  }
 0x1ea   : > { %1788 = vsyncadd (%p1572_p1), %s1362_s7, 4294967168  ;;  %s19_s23 = sadd.s32 1, %s1811_s23   ;;  %s2924_s18 = smov %s1795_s19 }
 0x1eb   : > { %p16_p2 = scmp.ge.s32.totalorder %s19_s23, 4   ;;  %s2925_s19 = smov %s1799_s20 }
 0x1ec   : > { %s2926_s20 = smov %s1904_s6  ;;  %s2927_s21 = smov %s1807_s22 }
 0x1ed   : > { %s2928_s22 = smov %s2930_s26  ;;  %18 = sbr.rel (!%p16_p2) target bundleno = 4 (0x4), region = 92 }
 0x1f2   :  { %1377 = vsyncpa [#allocation3], 1 }
 0x1f3   :  { %1379 = vsyncpa [#allocation3 + $0x1], 1 }

</bundles_post_ra>
